<compile_context>
chip_gen: v7x
topology: tpu7x:2x2x1
jax: 0.10.0
libtpu: 0.0.40
codegen_flags: <defaults>
</compile_context>

<pallas_src>
import functools

import jax
import jax.numpy as jnp
from jax.experimental import pallas as pl
from jax.experimental.pallas import tpu as pltpu


def _round_up(x, m):
    return ((x + m - 1) // m) * m


def _postnet_fused_kernel(x_ref, w_ref, scale_ref, shift_ref, out_ref,
                          buf_a, buf_b, acc_ref, *,
                          L, K, Tt, E8, LP, T, layer_dims):
    """All PostNet layers for one (batch, time-tile) grid point.

    x_ref     : (1, 1, E8, cin_pad)  halo'd, zero-padded input window (bf16)
    w_ref     : (L, K, cmax, cmax)   stacked, channel-padded conv weights (bf16)
    scale_ref : (L, 1, cmax)         folded BN scale (f32)
    shift_ref : (L, 1, cmax)         folded BN shift + conv bias (f32)
    out_ref   : (1, 1, Tt, cout_pad) output tile
    buf_a/b   : (E8 + 2*LP, cmax)    bf16 ping-pong activation buffers (VMEM)
    acc_ref   : (E8, cmax)           f32 conv accumulator (VMEM)
    """
    P = (K - 1) // 2
    H = P * L
    t = pl.program_id(1)

    # Zero both ping-pong buffers: the LP halo rows at each end act as the conv
    # zero padding for every layer, and unused channel columns must read as 0.
    buf_a[...] = jnp.zeros_like(buf_a)
    buf_b[...] = jnp.zeros_like(buf_b)

    # Stage the (already halo'd + zero-padded) input tile into buffer A.
    cin0 = layer_dims[0][0]
    buf_a[LP:LP + E8, 0:cin0] = x_ref[0, 0]

    # Rows whose global time index falls outside [0, T) must read as zero for
    # the next layer (PyTorch zero-pads every conv at the true sequence edge).
    g0 = t * Tt - H
    row = jax.lax.broadcasted_iota(jnp.int32, (E8, 1), 0) + g0
    valid = jnp.logical_and(row >= 0, row < T)

    bufs = (buf_a, buf_b)
    for l in range(L):                              # static, unrolled layer loop
        cin, cout = layer_dims[l]
        src = bufs[l % 2]
        dst = bufs[(l + 1) % 2]

        # Conv1d as K shifted MXU matmuls, accumulated in f32 VMEM scratch.
        for k in range(K):
            sl = src[LP - P + k:LP - P + k + E8, 0:cin]            # (E8, cin) bf16
            part = jnp.dot(sl, w_ref[l, k, 0:cin, 0:cout],
                           preferred_element_type=jnp.float32)      # (E8, cout) f32
            if k == 0:
                acc_ref[:, 0:cout] = part
            else:
                acc_ref[:, 0:cout] += part

        # BatchNorm (eval) with the conv bias folded into `shift`, then tanh.
        y = acc_ref[:, 0:cout] * scale_ref[l, :, 0:cout] + shift_ref[l, :, 0:cout]
        y = jnp.tanh(y)
        # Dropout omitted: identity in eval/inference mode.

        if l < L - 1:
            y = jnp.where(valid, y, 0.0)            # sequence-edge zero padding
            dst[LP:LP + E8, 0:cout] = y.astype(dst.dtype)
        else:
            # Final layer: emit only the Tt exact rows of this tile.
            out_ref[0, 0] = y[H:H + Tt, :].astype(out_ref.dtype)


@functools.partial(jax.jit, static_argnames=("kernel_size", "time_tile"))
def postnet_forward(x_ncl, params, *, kernel_size, time_tile=None):
    """x_ncl: (B, num_mel_bins, T) in PyTorch NCL; returns (B, num_mel_bins, T)."""
    B, C_mel, T = x_ncl.shape
    L = len(params)
    K = kernel_size
    P = (K - 1) // 2
    H = P * L                                        # total halo per side

    if time_tile is None:
        time_tile = min(256, _round_up(T, 8))
    Tt = _round_up(time_tile, 8)
    nT = (T + Tt - 1) // Tt
    E8 = _round_up(Tt + 2 * H, 8)                    # in-kernel working extent
    LP = 8                                           # physical zero-pad rows (>= P, aligned)

    layer_dims = tuple((_round_up(w.shape[1], 128), _round_up(w.shape[2], 128))
                       for (w, _, _, _) in params)
    cmax = max(max(d) for d in layer_dims)
    cin_pad = layer_dims[0][0]
    cout_pad = layer_dims[-1][1]

    # ---- pack parameters: pad channels, fold conv bias into BN shift, bf16 ----
    w_st = jnp.zeros((L, K, cmax, cmax), jnp.bfloat16)
    sc_st = jnp.zeros((L, 1, cmax), jnp.float32)
    sh_st = jnp.zeros((L, 1, cmax), jnp.float32)
    for l, (w, b, scale, shift) in enumerate(params):
        cin, cout = w.shape[1], w.shape[2]
        w_st = w_st.at[l, :, :cin, :cout].set(w.astype(jnp.bfloat16))
        sc_st = sc_st.at[l, 0, :cout].set(scale.astype(jnp.float32))
        sh_st = sh_st.at[l, 0, :cout].set((b * scale + shift).astype(jnp.float32))

    # ---- overlapping, zero-padded input windows: (B, nT, E8, cin_pad) bf16 ----
    x_btc = jnp.transpose(x_ncl, (0, 2, 1))                          # (B, T, C)
    pad_r = (nT - 1) * Tt + E8 - (T + H)
    x_p = jnp.pad(x_btc, ((0, 0), (H, pad_r), (0, cin_pad - C_mel)))
    idx = jnp.arange(nT)[:, None] * Tt + jnp.arange(E8)[None, :]     # (nT, E8)
    x_halo = x_p[:, idx, :].astype(jnp.bfloat16)

    kernel = functools.partial(
        _postnet_fused_kernel,
        L=L, K=K, Tt=Tt, E8=E8, LP=LP, T=T, layer_dims=layer_dims)

    out = pl.pallas_call(
        kernel,
        out_shape=jax.ShapeDtypeStruct((B, nT, Tt, cout_pad), jnp.float32),
        grid_spec=pltpu.PrefetchScalarGridSpec(
            num_scalar_prefetch=0,
            grid=(B, nT),
            in_specs=[
                pl.BlockSpec((1, 1, E8, cin_pad), lambda b, t: (b, t, 0, 0)),
                # Constant index maps: weights / BN params stay VMEM resident
                # (no re-DMA between grid steps).
                pl.BlockSpec((L, K, cmax, cmax), lambda b, t: (0, 0, 0, 0)),
                pl.BlockSpec((L, 1, cmax), lambda b, t: (0, 0, 0)),
                pl.BlockSpec((L, 1, cmax), lambda b, t: (0, 0, 0)),
            ],
            out_specs=pl.BlockSpec((1, 1, Tt, cout_pad), lambda b, t: (b, t, 0, 0)),
            scratch_shapes=[
                pltpu.VMEM((E8 + 2 * LP, cmax), jnp.bfloat16),   # ping activation buf
                pltpu.VMEM((E8 + 2 * LP, cmax), jnp.bfloat16),   # pong activation buf
                pltpu.VMEM((E8, cmax), jnp.float32),             # f32 conv accumulator
            ]),
        compiler_params=pltpu.CompilerParams(
            dimension_semantics=("parallel", "parallel"),
            vmem_limit_bytes=48 * 1024 * 1024),
    )(x_halo, w_st, sc_st, sh_st)

    out = out.reshape(B, nT * Tt, cout_pad)[:, :T, :C_mel]
    return jnp.transpose(out, (0, 2, 1))                             # (B, C, T)


def make_postnet_params(key, num_mel_bins, postnet_dim, num_conv_layers,
                        kernel_size, dtype=jnp.float32):
    """Deterministic synthetic parameters (same shapes as the PyTorch module)."""
    assert num_conv_layers > 2, "PostNet num_conv_layers should be bigger than 2"
    dims = ([num_mel_bins]
            + [postnet_dim] * (num_conv_layers - 1)
            + [num_mel_bins])
    eps = 1e-5
    params = []
    for i in range(num_conv_layers):
        c_in, c_out = dims[i], dims[i + 1]
        key, kw, kb = jax.random.split(key, 3)
        # Conv1d weight (c_out, c_in, K) in PyTorch -> stored tap-major (K, c_in, c_out)
        w = 0.1 * jax.random.normal(kw, (kernel_size, c_in, c_out), dtype)
        b = 0.1 * jax.random.normal(kb, (c_out,), dtype)
        # BatchNorm1d default init & running stats: gamma=1, beta=0, mean=0, var=1
        gamma = jnp.ones((c_out,), dtype)
        beta = jnp.zeros((c_out,), dtype)
        running_mean = jnp.zeros((c_out,), dtype)
        running_var = jnp.ones((c_out,), dtype)
        scale = gamma / jnp.sqrt(running_var + eps)
        shift = beta - running_mean * scale
        params.append((w, b, scale, shift))
    return params


def _reference_forward(x_ncl, params, *, kernel_size):
    """Pure-JAX f32 reference with exact PyTorch (eval) semantics."""
    P = (kernel_size - 1) // 2
    x = jnp.transpose(x_ncl, (0, 2, 1)).astype(jnp.float32)          # (B, T, C)
    for (w, b, scale, shift) in params:
        B, T, _ = x.shape
        xp = jnp.pad(x, ((0, 0), (P, P), (0, 0)))
        y = jnp.zeros((B, T, w.shape[2]), jnp.float32)
        for k in range(kernel_size):
            y = y + jnp.einsum("btc,cd->btd", xp[:, k:k + T, :],
                               w[k].astype(jnp.float32))
        y = (y + b) * scale + shift
        x = jnp.tanh(y)
    return jnp.transpose(x, (0, 2, 1))


if __name__ == "__main__":
    # Small shapes consistent with the module (scaled-down mel bins / postnet dim).
    batch = 2
    num_mel_bins = 8
    postnet_dim = 16
    num_conv_layers = 3
    kernel_size = 5
    seq_len = 16

    key = jax.random.PRNGKey(0)
    key, kx = jax.random.split(key)
    x = jax.random.normal(kx, (batch, num_mel_bins, seq_len), jnp.float32)

    params = make_postnet_params(key, num_mel_bins, postnet_dim,
                                 num_conv_layers, kernel_size)

    # time_tile=8 -> 2 time tiles, exercising the halo / masking path.
    out = postnet_forward(x, params, kernel_size=kernel_size, time_tile=8)
    out = jax.block_until_ready(out)

    ref = _reference_forward(x, params, kernel_size=kernel_size)
    assert out.shape == (batch, num_mel_bins, seq_len)
    # bf16 MXU inputs + bf16 inter-layer activations => loosened tolerance vs the
    # pure-f32 reference (numerical, not semantic, difference).
    assert jnp.allclose(out, ref, atol=3e-2, rtol=3e-2), "mismatch vs reference"

    print("KERNEL_OK")
</pallas_src>

<mosaic_0001>
module attributes {stable_mosaic.version = 11 : i64} {
  func.func @_postnet_fused_kernel(%arg0: i32, %arg1: i32, %arg2: memref<1x1x24x128xbf16, #tpu.memory_space<vmem>>, %arg3: memref<3x5x128x128xbf16, #tpu.memory_space<vmem>>, %arg4: memref<3x1x128xf32, #tpu.memory_space<vmem>>, %arg5: memref<3x1x128xf32, #tpu.memory_space<vmem>>, %arg6: memref<1x1x8x128xf32, #tpu.memory_space<vmem>>, %arg7: memref<40x128xbf16, #tpu.memory_space<vmem>>, %arg8: memref<40x128xbf16, #tpu.memory_space<vmem>>, %arg9: memref<24x128xf32, #tpu.memory_space<vmem>>) attributes {dimension_semantics = [#tpu.dimension_semantics<parallel>, #tpu.dimension_semantics<parallel>], iteration_bounds = array<i64: 2, 2>, scalar_prefetch = 0 : i64, scratch_operands = 3 : i64, tpu.core_type = #tpu.core_type<tc>, window_params = [{transform_indices = @transform_0, window_bounds = array<i64: 1, 1, 24, 128>}, {pipeline_mode = #tpu.pipeline_mode<synchronous>, transform_indices = @transform_1, window_bounds = array<i64: 3, 5, 128, 128>}, {pipeline_mode = #tpu.pipeline_mode<synchronous>, transform_indices = @transform_2, window_bounds = array<i64: 3, 1, 128>}, {pipeline_mode = #tpu.pipeline_mode<synchronous>, transform_indices = @transform_3, window_bounds = array<i64: 3, 1, 128>}, {transform_indices = @transform_4, window_bounds = array<i64: 1, 1, 8, 128>}]} {
    %cst = arith.constant 0.000000e+00 : bf16
    %0 = vector.broadcast %cst : bf16 to vector<40x128xbf16>
    %c0 = arith.constant 0 : index
    %c0_0 = arith.constant 0 : index
    %1 = vector.load %arg7[%c0, %c0_0] : memref<40x128xbf16, #tpu.memory_space<vmem>>, vector<40x128xbf16>
    tpu.vector_store %arg7[%c0, %c0_0], %0 {strides = array<i32>} : memref<40x128xbf16, #tpu.memory_space<vmem>>, vector<40x128xbf16>,
    %cst_1 = arith.constant 0.000000e+00 : bf16
    %2 = vector.broadcast %cst_1 : bf16 to vector<40x128xbf16>
    %c0_2 = arith.constant 0 : index
    %c0_3 = arith.constant 0 : index
    %3 = vector.load %arg8[%c0_2, %c0_3] : memref<40x128xbf16, #tpu.memory_space<vmem>>, vector<40x128xbf16>
    tpu.vector_store %arg8[%c0_2, %c0_3], %2 {strides = array<i32>} : memref<40x128xbf16, #tpu.memory_space<vmem>>, vector<40x128xbf16>,
    %c0_4 = arith.constant 0 : index
    %c0_5 = arith.constant 0 : index
    %c0_6 = arith.constant 0 : index
    %c0_7 = arith.constant 0 : index
    %4 = vector.load %arg2[%c0_4, %c0_5, %c0_6, %c0_7] : memref<1x1x24x128xbf16, #tpu.memory_space<vmem>>, vector<1x1x24x128xbf16>
    %5 = vector.shape_cast %4 : vector<1x1x24x128xbf16> to vector<24x128xbf16>
    %c8 = arith.constant 8 : index
    %c0_8 = arith.constant 0 : index
    %6 = vector.load %arg7[%c8, %c0_8] : memref<40x128xbf16, #tpu.memory_space<vmem>>, vector<24x128xbf16>
    tpu.vector_store %arg7[%c8, %c0_8], %5 {strides = array<i32>} : memref<40x128xbf16, #tpu.memory_space<vmem>>, vector<24x128xbf16>,
    %c8_i32 = arith.constant 8 : i32
    %7 = arith.muli %arg1, %c8_i32 : i32
    %c6_i32 = arith.constant 6 : i32
    %8 = arith.subi %7, %c6_i32 : i32
    %9 = tpu.iota {dimensions = array<i32: 0>} : vector<24x1xi32>
    %10 = vector.broadcast %8 : i32 to vector<24x1xi32>
    %11 = arith.addi %9, %10 : vector<24x1xi32>
    %c0_i32 = arith.constant 0 : i32
    %12 = vector.broadcast %c0_i32 : i32 to vector<24x1xi32>
    %13 = arith.cmpi sge, %11, %12 : vector<24x1xi32>
    %c16_i32 = arith.constant 16 : i32
    %14 = vector.broadcast %c16_i32 : i32 to vector<24x1xi32>
    %15 = arith.cmpi slt, %11, %14 : vector<24x1xi32>
    %16 = arith.andi %13, %15 : vector<24x1xi1>
    %c6 = arith.constant 6 : index
    %c0_9 = arith.constant 0 : index
    %17 = vector.load %arg7[%c6, %c0_9] : memref<40x128xbf16, #tpu.memory_space<vmem>>, vector<24x128xbf16>
    %c0_10 = arith.constant 0 : index
    %c0_11 = arith.constant 0 : index
    %c0_12 = arith.constant 0 : index
    %c0_13 = arith.constant 0 : index
    %18 = vector.load %arg3[%c0_10, %c0_11, %c0_12, %c0_13] : memref<3x5x128x128xbf16, #tpu.memory_space<vmem>>, vector<1x1x128x128xbf16>
    %19 = vector.shape_cast %18 : vector<1x1x128x128xbf16> to vector<128x128xbf16>
    %cst_14 = arith.constant dense<0.000000e+00> : vector<24x128xf32>
    %20 = tpu.matmul %17, %19, %cst_14 {dimension_numbers = #tpu.dot_dimension_numbers<[1], [0], [0], [1], [0, 0, 1, 1], [], []>} : vector<24x128xbf16>, vector<128x128xbf16>, vector<24x128xf32> -> vector<24x128xf32>
    %c0_15 = arith.constant 0 : index
    %c0_16 = arith.constant 0 : index
    %21 = vector.load %arg9[%c0_15, %c0_16] : memref<24x128xf32, #tpu.memory_space<vmem>>, vector<24x128xf32>
    tpu.vector_store %arg9[%c0_15, %c0_16], %20 {strides = array<i32>} : memref<24x128xf32, #tpu.memory_space<vmem>>, vector<24x128xf32>,
    %c7 = arith.constant 7 : index
    %c0_17 = arith.constant 0 : index
    %22 = vector.load %arg7[%c7, %c0_17] : memref<40x128xbf16, #tpu.memory_space<vmem>>, vector<24x128xbf16>
    %c0_18 = arith.constant 0 : index
    %c1 = arith.constant 1 : index
    %c0_19 = arith.constant 0 : index
    %c0_20 = arith.constant 0 : index
    %23 = vector.load %arg3[%c0_18, %c1, %c0_19, %c0_20] : memref<3x5x128x128xbf16, #tpu.memory_space<vmem>>, vector<1x1x128x128xbf16>
    %24 = vector.shape_cast %23 : vector<1x1x128x128xbf16> to vector<128x128xbf16>
    %cst_21 = arith.constant dense<0.000000e+00> : vector<24x128xf32>
    %25 = tpu.matmul %22, %24, %cst_21 {dimension_numbers = #tpu.dot_dimension_numbers<[1], [0], [0], [1], [0, 0, 1, 1], [], []>} : vector<24x128xbf16>, vector<128x128xbf16>, vector<24x128xf32> -> vector<24x128xf32>
    %c0_22 = arith.constant 0 : index
    %c0_23 = arith.constant 0 : index
    %26 = vector.load %arg9[%c0_22, %c0_23] : memref<24x128xf32, #tpu.memory_space<vmem>>, vector<24x128xf32>
    %27 = arith.addf %26, %25 : vector<24x128xf32>
    %c0_24 = arith.constant 0 : index
    %c0_25 = arith.constant 0 : index
    %28 = vector.load %arg9[%c0_24, %c0_25] : memref<24x128xf32, #tpu.memory_space<vmem>>, vector<24x128xf32>
    tpu.vector_store %arg9[%c0_24, %c0_25], %27 {strides = array<i32>} : memref<24x128xf32, #tpu.memory_space<vmem>>, vector<24x128xf32>,
    %c8_26 = arith.constant 8 : index
    %c0_27 = arith.constant 0 : index
    %29 = vector.load %arg7[%c8_26, %c0_27] : memref<40x128xbf16, #tpu.memory_space<vmem>>, vector<24x128xbf16>
    %c0_28 = arith.constant 0 : index
    %c2 = arith.constant 2 : index
    %c0_29 = arith.constant 0 : index
    %c0_30 = arith.constant 0 : index
    %30 = vector.load %arg3[%c0_28, %c2, %c0_29, %c0_30] : memref<3x5x128x128xbf16, #tpu.memory_space<vmem>>, vector<1x1x128x128xbf16>
    %31 = vector.shape_cast %30 : vector<1x1x128x128xbf16> to vector<128x128xbf16>
    %cst_31 = arith.constant dense<0.000000e+00> : vector<24x128xf32>
    %32 = tpu.matmul %29, %31, %cst_31 {dimension_numbers = #tpu.dot_dimension_numbers<[1], [0], [0], [1], [0, 0, 1, 1], [], []>} : vector<24x128xbf16>, vector<128x128xbf16>, vector<24x128xf32> -> vector<24x128xf32>
    %c0_32 = arith.constant 0 : index
    %c0_33 = arith.constant 0 : index
    %33 = vector.load %arg9[%c0_32, %c0_33] : memref<24x128xf32, #tpu.memory_space<vmem>>, vector<24x128xf32>
    %34 = arith.addf %33, %32 : vector<24x128xf32>
    %c0_34 = arith.constant 0 : index
    %c0_35 = arith.constant 0 : index
    %35 = vector.load %arg9[%c0_34, %c0_35] : memref<24x128xf32, #tpu.memory_space<vmem>>, vector<24x128xf32>
    tpu.vector_store %arg9[%c0_34, %c0_35], %34 {strides = array<i32>} : memref<24x128xf32, #tpu.memory_space<vmem>>, vector<24x128xf32>,
    %c9 = arith.constant 9 : index
    %c0_36 = arith.constant 0 : index
    %36 = vector.load %arg7[%c9, %c0_36] : memref<40x128xbf16, #tpu.memory_space<vmem>>, vector<24x128xbf16>
    %c0_37 = arith.constant 0 : index
    %c3 = arith.constant 3 : index
    %c0_38 = arith.constant 0 : index
    %c0_39 = arith.constant 0 : index
    %37 = vector.load %arg3[%c0_37, %c3, %c0_38, %c0_39] : memref<3x5x128x128xbf16, #tpu.memory_space<vmem>>, vector<1x1x128x128xbf16>
    %38 = vector.shape_cast %37 : vector<1x1x128x128xbf16> to vector<128x128xbf16>
    %cst_40 = arith.constant dense<0.000000e+00> : vector<24x128xf32>
    %39 = tpu.matmul %36, %38, %cst_40 {dimension_numbers = #tpu.dot_dimension_numbers<[1], [0], [0], [1], [0, 0, 1, 1], [], []>} : vector<24x128xbf16>, vector<128x128xbf16>, vector<24x128xf32> -> vector<24x128xf32>
    %c0_41 = arith.constant 0 : index
    %c0_42 = arith.constant 0 : index
    %40 = vector.load %arg9[%c0_41, %c0_42] : memref<24x128xf32, #tpu.memory_space<vmem>>, vector<24x128xf32>
    %41 = arith.addf %40, %39 : vector<24x128xf32>
    %c0_43 = arith.constant 0 : index
    %c0_44 = arith.constant 0 : index
    %42 = vector.load %arg9[%c0_43, %c0_44] : memref<24x128xf32, #tpu.memory_space<vmem>>, vector<24x128xf32>
    tpu.vector_store %arg9[%c0_43, %c0_44], %41 {strides = array<i32>} : memref<24x128xf32, #tpu.memory_space<vmem>>, vector<24x128xf32>,
    %c10 = arith.constant 10 : index
    %c0_45 = arith.constant 0 : index
    %43 = vector.load %arg7[%c10, %c0_45] : memref<40x128xbf16, #tpu.memory_space<vmem>>, vector<24x128xbf16>
    %c0_46 = arith.constant 0 : index
    %c4 = arith.constant 4 : index
    %c0_47 = arith.constant 0 : index
    %c0_48 = arith.constant 0 : index
    %44 = vector.load %arg3[%c0_46, %c4, %c0_47, %c0_48] : memref<3x5x128x128xbf16, #tpu.memory_space<vmem>>, vector<1x1x128x128xbf16>
    %45 = vector.shape_cast %44 : vector<1x1x128x128xbf16> to vector<128x128xbf16>
    %cst_49 = arith.constant dense<0.000000e+00> : vector<24x128xf32>
    %46 = tpu.matmul %43, %45, %cst_49 {dimension_numbers = #tpu.dot_dimension_numbers<[1], [0], [0], [1], [0, 0, 1, 1], [], []>} : vector<24x128xbf16>, vector<128x128xbf16>, vector<24x128xf32> -> vector<24x128xf32>
    %c0_50 = arith.constant 0 : index
    %c0_51 = arith.constant 0 : index
    %47 = vector.load %arg9[%c0_50, %c0_51] : memref<24x128xf32, #tpu.memory_space<vmem>>, vector<24x128xf32>
    %48 = arith.addf %47, %46 : vector<24x128xf32>
    %c0_52 = arith.constant 0 : index
    %c0_53 = arith.constant 0 : index
    %49 = vector.load %arg9[%c0_52, %c0_53] : memref<24x128xf32, #tpu.memory_space<vmem>>, vector<24x128xf32>
    tpu.vector_store %arg9[%c0_52, %c0_53], %48 {strides = array<i32>} : memref<24x128xf32, #tpu.memory_space<vmem>>, vector<24x128xf32>,
    %c0_54 = arith.constant 0 : index
    %c0_55 = arith.constant 0 : index
    %50 = vector.load %arg9[%c0_54, %c0_55] : memref<24x128xf32, #tpu.memory_space<vmem>>, vector<24x128xf32>
    %c0_56 = arith.constant 0 : index
    %c0_57 = arith.constant 0 : index
    %c0_58 = arith.constant 0 : index
    %51 = vector.load %arg4[%c0_56, %c0_57, %c0_58] : memref<3x1x128xf32, #tpu.memory_space<vmem>>, vector<1x1x128xf32>
    %52 = vector.shape_cast %51 : vector<1x1x128xf32> to vector<1x128xf32>
    %53 = vector.broadcast %52 : vector<1x128xf32> to vector<24x128xf32>
    %54 = arith.mulf %50, %53 : vector<24x128xf32>
    %c0_59 = arith.constant 0 : index
    %c0_60 = arith.constant 0 : index
    %c0_61 = arith.constant 0 : index
    %55 = vector.load %arg5[%c0_59, %c0_60, %c0_61] : memref<3x1x128xf32, #tpu.memory_space<vmem>>, vector<1x1x128xf32>
    %56 = vector.shape_cast %55 : vector<1x1x128xf32> to vector<1x128xf32>
    %57 = vector.broadcast %56 : vector<1x128xf32> to vector<24x128xf32>
    %58 = arith.addf %54, %57 : vector<24x128xf32>
    %59 = math.tanh %58 : vector<24x128xf32>
    %cst_62 = arith.constant 0.000000e+00 : f32
    %60 = vector.shape_cast %16 : vector<24x1xi1> to vector<24x1xi1>
    %61 = vector.broadcast %60 : vector<24x1xi1> to vector<24x128xi1>
    %62 = vector.broadcast %cst_62 : f32 to vector<24x128xf32>
    %63 = arith.select %61, %59, %62 : vector<24x128xi1>, vector<24x128xf32>
    %64 = arith.truncf %63 : vector<24x128xf32> to vector<24x128xbf16>
    %c8_63 = arith.constant 8 : index
    %c0_64 = arith.constant 0 : index
    %65 = vector.load %arg8[%c8_63, %c0_64] : memref<40x128xbf16, #tpu.memory_space<vmem>>, vector<24x128xbf16>
    tpu.vector_store %arg8[%c8_63, %c0_64], %64 {strides = array<i32>} : memref<40x128xbf16, #tpu.memory_space<vmem>>, vector<24x128xbf16>,
    %c6_65 = arith.constant 6 : index
    %c0_66 = arith.constant 0 : index
    %66 = vector.load %arg8[%c6_65, %c0_66] : memref<40x128xbf16, #tpu.memory_space<vmem>>, vector<24x128xbf16>
    %c1_67 = arith.constant 1 : index
    %c0_68 = arith.constant 0 : index
    %c0_69 = arith.constant 0 : index
    %c0_70 = arith.constant 0 : index
    %67 = vector.load %arg3[%c1_67, %c0_68, %c0_69, %c0_70] : memref<3x5x128x128xbf16, #tpu.memory_space<vmem>>, vector<1x1x128x128xbf16>
    %68 = vector.shape_cast %67 : vector<1x1x128x128xbf16> to vector<128x128xbf16>
    %cst_71 = arith.constant dense<0.000000e+00> : vector<24x128xf32>
    %69 = tpu.matmul %66, %68, %cst_71 {dimension_numbers = #tpu.dot_dimension_numbers<[1], [0], [0], [1], [0, 0, 1, 1], [], []>} : vector<24x128xbf16>, vector<128x128xbf16>, vector<24x128xf32> -> vector<24x128xf32>
    %c0_72 = arith.constant 0 : index
    %c0_73 = arith.constant 0 : index
    %70 = vector.load %arg9[%c0_72, %c0_73] : memref<24x128xf32, #tpu.memory_space<vmem>>, vector<24x128xf32>
    tpu.vector_store %arg9[%c0_72, %c0_73], %69 {strides = array<i32>} : memref<24x128xf32, #tpu.memory_space<vmem>>, vector<24x128xf32>,
    %c7_74 = arith.constant 7 : index
    %c0_75 = arith.constant 0 : index
    %71 = vector.load %arg8[%c7_74, %c0_75] : memref<40x128xbf16, #tpu.memory_space<vmem>>, vector<24x128xbf16>
    %c1_76 = arith.constant 1 : index
    %c1_77 = arith.constant 1 : index
    %c0_78 = arith.constant 0 : index
    %c0_79 = arith.constant 0 : index
    %72 = vector.load %arg3[%c1_76, %c1_77, %c0_78, %c0_79] : memref<3x5x128x128xbf16, #tpu.memory_space<vmem>>, vector<1x1x128x128xbf16>
    %73 = vector.shape_cast %72 : vector<1x1x128x128xbf16> to vector<128x128xbf16>
    %cst_80 = arith.constant dense<0.000000e+00> : vector<24x128xf32>
    %74 = tpu.matmul %71, %73, %cst_80 {dimension_numbers = #tpu.dot_dimension_numbers<[1], [0], [0], [1], [0, 0, 1, 1], [], []>} : vector<24x128xbf16>, vector<128x128xbf16>, vector<24x128xf32> -> vector<24x128xf32>
    %c0_81 = arith.constant 0 : index
    %c0_82 = arith.constant 0 : index
    %75 = vector.load %arg9[%c0_81, %c0_82] : memref<24x128xf32, #tpu.memory_space<vmem>>, vector<24x128xf32>
    %76 = arith.addf %75, %74 : vector<24x128xf32>
    %c0_83 = arith.constant 0 : index
    %c0_84 = arith.constant 0 : index
    %77 = vector.load %arg9[%c0_83, %c0_84] : memref<24x128xf32, #tpu.memory_space<vmem>>, vector<24x128xf32>
    tpu.vector_store %arg9[%c0_83, %c0_84], %76 {strides = array<i32>} : memref<24x128xf32, #tpu.memory_space<vmem>>, vector<24x128xf32>,
    %c8_85 = arith.constant 8 : index
    %c0_86 = arith.constant 0 : index
    %78 = vector.load %arg8[%c8_85, %c0_86] : memref<40x128xbf16, #tpu.memory_space<vmem>>, vector<24x128xbf16>
    %c1_87 = arith.constant 1 : index
    %c2_88 = arith.constant 2 : index
    %c0_89 = arith.constant 0 : index
    %c0_90 = arith.constant 0 : index
    %79 = vector.load %arg3[%c1_87, %c2_88, %c0_89, %c0_90] : memref<3x5x128x128xbf16, #tpu.memory_space<vmem>>, vector<1x1x128x128xbf16>
    %80 = vector.shape_cast %79 : vector<1x1x128x128xbf16> to vector<128x128xbf16>
    %cst_91 = arith.constant dense<0.000000e+00> : vector<24x128xf32>
    %81 = tpu.matmul %78, %80, %cst_91 {dimension_numbers = #tpu.dot_dimension_numbers<[1], [0], [0], [1], [0, 0, 1, 1], [], []>} : vector<24x128xbf16>, vector<128x128xbf16>, vector<24x128xf32> -> vector<24x128xf32>
    %c0_92 = arith.constant 0 : index
    %c0_93 = arith.constant 0 : index
    %82 = vector.load %arg9[%c0_92, %c0_93] : memref<24x128xf32, #tpu.memory_space<vmem>>, vector<24x128xf32>
    %83 = arith.addf %82, %81 : vector<24x128xf32>
    %c0_94 = arith.constant 0 : index
    %c0_95 = arith.constant 0 : index
    %84 = vector.load %arg9[%c0_94, %c0_95] : memref<24x128xf32, #tpu.memory_space<vmem>>, vector<24x128xf32>
    tpu.vector_store %arg9[%c0_94, %c0_95], %83 {strides = array<i32>} : memref<24x128xf32, #tpu.memory_space<vmem>>, vector<24x128xf32>,
    %c9_96 = arith.constant 9 : index
    %c0_97 = arith.constant 0 : index
    %85 = vector.load %arg8[%c9_96, %c0_97] : memref<40x128xbf16, #tpu.memory_space<vmem>>, vector<24x128xbf16>
    %c1_98 = arith.constant 1 : index
    %c3_99 = arith.constant 3 : index
    %c0_100 = arith.constant 0 : index
    %c0_101 = arith.constant 0 : index
    %86 = vector.load %arg3[%c1_98, %c3_99, %c0_100, %c0_101] : memref<3x5x128x128xbf16, #tpu.memory_space<vmem>>, vector<1x1x128x128xbf16>
    %87 = vector.shape_cast %86 : vector<1x1x128x128xbf16> to vector<128x128xbf16>
    %cst_102 = arith.constant dense<0.000000e+00> : vector<24x128xf32>
    %88 = tpu.matmul %85, %87, %cst_102 {dimension_numbers = #tpu.dot_dimension_numbers<[1], [0], [0], [1], [0, 0, 1, 1], [], []>} : vector<24x128xbf16>, vector<128x128xbf16>, vector<24x128xf32> -> vector<24x128xf32>
    %c0_103 = arith.constant 0 : index
    %c0_104 = arith.constant 0 : index
    %89 = vector.load %arg9[%c0_103, %c0_104] : memref<24x128xf32, #tpu.memory_space<vmem>>, vector<24x128xf32>
    %90 = arith.addf %89, %88 : vector<24x128xf32>
    %c0_105 = arith.constant 0 : index
    %c0_106 = arith.constant 0 : index
    %91 = vector.load %arg9[%c0_105, %c0_106] : memref<24x128xf32, #tpu.memory_space<vmem>>, vector<24x128xf32>
    tpu.vector_store %arg9[%c0_105, %c0_106], %90 {strides = array<i32>} : memref<24x128xf32, #tpu.memory_space<vmem>>, vector<24x128xf32>,
    %c10_107 = arith.constant 10 : index
    %c0_108 = arith.constant 0 : index
    %92 = vector.load %arg8[%c10_107, %c0_108] : memref<40x128xbf16, #tpu.memory_space<vmem>>, vector<24x128xbf16>
    %c1_109 = arith.constant 1 : index
    %c4_110 = arith.constant 4 : index
    %c0_111 = arith.constant 0 : index
    %c0_112 = arith.constant 0 : index
    %93 = vector.load %arg3[%c1_109, %c4_110, %c0_111, %c0_112] : memref<3x5x128x128xbf16, #tpu.memory_space<vmem>>, vector<1x1x128x128xbf16>
    %94 = vector.shape_cast %93 : vector<1x1x128x128xbf16> to vector<128x128xbf16>
    %cst_113 = arith.constant dense<0.000000e+00> : vector<24x128xf32>
    %95 = tpu.matmul %92, %94, %cst_113 {dimension_numbers = #tpu.dot_dimension_numbers<[1], [0], [0], [1], [0, 0, 1, 1], [], []>} : vector<24x128xbf16>, vector<128x128xbf16>, vector<24x128xf32> -> vector<24x128xf32>
    %c0_114 = arith.constant 0 : index
    %c0_115 = arith.constant 0 : index
    %96 = vector.load %arg9[%c0_114, %c0_115] : memref<24x128xf32, #tpu.memory_space<vmem>>, vector<24x128xf32>
    %97 = arith.addf %96, %95 : vector<24x128xf32>
    %c0_116 = arith.constant 0 : index
    %c0_117 = arith.constant 0 : index
    %98 = vector.load %arg9[%c0_116, %c0_117] : memref<24x128xf32, #tpu.memory_space<vmem>>, vector<24x128xf32>
    tpu.vector_store %arg9[%c0_116, %c0_117], %97 {strides = array<i32>} : memref<24x128xf32, #tpu.memory_space<vmem>>, vector<24x128xf32>,
    %c0_118 = arith.constant 0 : index
    %c0_119 = arith.constant 0 : index
    %99 = vector.load %arg9[%c0_118, %c0_119] : memref<24x128xf32, #tpu.memory_space<vmem>>, vector<24x128xf32>
    %c1_120 = arith.constant 1 : index
    %c0_121 = arith.constant 0 : index
    %c0_122 = arith.constant 0 : index
    %100 = vector.load %arg4[%c1_120, %c0_121, %c0_122] : memref<3x1x128xf32, #tpu.memory_space<vmem>>, vector<1x1x128xf32>
    %101 = vector.shape_cast %100 : vector<1x1x128xf32> to vector<1x128xf32>
    %102 = vector.broadcast %101 : vector<1x128xf32> to vector<24x128xf32>
    %103 = arith.mulf %99, %102 : vector<24x128xf32>
    %c1_123 = arith.constant 1 : index
    %c0_124 = arith.constant 0 : index
    %c0_125 = arith.constant 0 : index
    %104 = vector.load %arg5[%c1_123, %c0_124, %c0_125] : memref<3x1x128xf32, #tpu.memory_space<vmem>>, vector<1x1x128xf32>
    %105 = vector.shape_cast %104 : vector<1x1x128xf32> to vector<1x128xf32>
    %106 = vector.broadcast %105 : vector<1x128xf32> to vector<24x128xf32>
    %107 = arith.addf %103, %106 : vector<24x128xf32>
    %108 = math.tanh %107 : vector<24x128xf32>
    %cst_126 = arith.constant 0.000000e+00 : f32
    %109 = vector.shape_cast %16 : vector<24x1xi1> to vector<24x1xi1>
    %110 = vector.broadcast %109 : vector<24x1xi1> to vector<24x128xi1>
    %111 = vector.broadcast %cst_126 : f32 to vector<24x128xf32>
    %112 = arith.select %110, %108, %111 : vector<24x128xi1>, vector<24x128xf32>
    %113 = arith.truncf %112 : vector<24x128xf32> to vector<24x128xbf16>
    %c8_127 = arith.constant 8 : index
    %c0_128 = arith.constant 0 : index
    %114 = vector.load %arg7[%c8_127, %c0_128] : memref<40x128xbf16, #tpu.memory_space<vmem>>, vector<24x128xbf16>
    tpu.vector_store %arg7[%c8_127, %c0_128], %113 {strides = array<i32>} : memref<40x128xbf16, #tpu.memory_space<vmem>>, vector<24x128xbf16>,
    %c6_129 = arith.constant 6 : index
    %c0_130 = arith.constant 0 : index
    %115 = vector.load %arg7[%c6_129, %c0_130] : memref<40x128xbf16, #tpu.memory_space<vmem>>, vector<24x128xbf16>
    %c2_131 = arith.constant 2 : index
    %c0_132 = arith.constant 0 : index
    %c0_133 = arith.constant 0 : index
    %c0_134 = arith.constant 0 : index
    %116 = vector.load %arg3[%c2_131, %c0_132, %c0_133, %c0_134] : memref<3x5x128x128xbf16, #tpu.memory_space<vmem>>, vector<1x1x128x128xbf16>
    %117 = vector.shape_cast %116 : vector<1x1x128x128xbf16> to vector<128x128xbf16>
    %cst_135 = arith.constant dense<0.000000e+00> : vector<24x128xf32>
    %118 = tpu.matmul %115, %117, %cst_135 {dimension_numbers = #tpu.dot_dimension_numbers<[1], [0], [0], [1], [0, 0, 1, 1], [], []>} : vector<24x128xbf16>, vector<128x128xbf16>, vector<24x128xf32> -> vector<24x128xf32>
    %c0_136 = arith.constant 0 : index
    %c0_137 = arith.constant 0 : index
    %119 = vector.load %arg9[%c0_136, %c0_137] : memref<24x128xf32, #tpu.memory_space<vmem>>, vector<24x128xf32>
    tpu.vector_store %arg9[%c0_136, %c0_137], %118 {strides = array<i32>} : memref<24x128xf32, #tpu.memory_space<vmem>>, vector<24x128xf32>,
    %c7_138 = arith.constant 7 : index
    %c0_139 = arith.constant 0 : index
    %120 = vector.load %arg7[%c7_138, %c0_139] : memref<40x128xbf16, #tpu.memory_space<vmem>>, vector<24x128xbf16>
    %c2_140 = arith.constant 2 : index
    %c1_141 = arith.constant 1 : index
    %c0_142 = arith.constant 0 : index
    %c0_143 = arith.constant 0 : index
    %121 = vector.load %arg3[%c2_140, %c1_141, %c0_142, %c0_143] : memref<3x5x128x128xbf16, #tpu.memory_space<vmem>>, vector<1x1x128x128xbf16>
    %122 = vector.shape_cast %121 : vector<1x1x128x128xbf16> to vector<128x128xbf16>
    %cst_144 = arith.constant dense<0.000000e+00> : vector<24x128xf32>
    %123 = tpu.matmul %120, %122, %cst_144 {dimension_numbers = #tpu.dot_dimension_numbers<[1], [0], [0], [1], [0, 0, 1, 1], [], []>} : vector<24x128xbf16>, vector<128x128xbf16>, vector<24x128xf32> -> vector<24x128xf32>
    %c0_145 = arith.constant 0 : index
    %c0_146 = arith.constant 0 : index
    %124 = vector.load %arg9[%c0_145, %c0_146] : memref<24x128xf32, #tpu.memory_space<vmem>>, vector<24x128xf32>
    %125 = arith.addf %124, %123 : vector<24x128xf32>
    %c0_147 = arith.constant 0 : index
    %c0_148 = arith.constant 0 : index
    %126 = vector.load %arg9[%c0_147, %c0_148] : memref<24x128xf32, #tpu.memory_space<vmem>>, vector<24x128xf32>
    tpu.vector_store %arg9[%c0_147, %c0_148], %125 {strides = array<i32>} : memref<24x128xf32, #tpu.memory_space<vmem>>, vector<24x128xf32>,
    %c8_149 = arith.constant 8 : index
    %c0_150 = arith.constant 0 : index
    %127 = vector.load %arg7[%c8_149, %c0_150] : memref<40x128xbf16, #tpu.memory_space<vmem>>, vector<24x128xbf16>
    %c2_151 = arith.constant 2 : index
    %c2_152 = arith.constant 2 : index
    %c0_153 = arith.constant 0 : index
    %c0_154 = arith.constant 0 : index
    %128 = vector.load %arg3[%c2_151, %c2_152, %c0_153, %c0_154] : memref<3x5x128x128xbf16, #tpu.memory_space<vmem>>, vector<1x1x128x128xbf16>
    %129 = vector.shape_cast %128 : vector<1x1x128x128xbf16> to vector<128x128xbf16>
    %cst_155 = arith.constant dense<0.000000e+00> : vector<24x128xf32>
    %130 = tpu.matmul %127, %129, %cst_155 {dimension_numbers = #tpu.dot_dimension_numbers<[1], [0], [0], [1], [0, 0, 1, 1], [], []>} : vector<24x128xbf16>, vector<128x128xbf16>, vector<24x128xf32> -> vector<24x128xf32>
    %c0_156 = arith.constant 0 : index
    %c0_157 = arith.constant 0 : index
    %131 = vector.load %arg9[%c0_156, %c0_157] : memref<24x128xf32, #tpu.memory_space<vmem>>, vector<24x128xf32>
    %132 = arith.addf %131, %130 : vector<24x128xf32>
    %c0_158 = arith.constant 0 : index
    %c0_159 = arith.constant 0 : index
    %133 = vector.load %arg9[%c0_158, %c0_159] : memref<24x128xf32, #tpu.memory_space<vmem>>, vector<24x128xf32>
    tpu.vector_store %arg9[%c0_158, %c0_159], %132 {strides = array<i32>} : memref<24x128xf32, #tpu.memory_space<vmem>>, vector<24x128xf32>,
    %c9_160 = arith.constant 9 : index
    %c0_161 = arith.constant 0 : index
    %134 = vector.load %arg7[%c9_160, %c0_161] : memref<40x128xbf16, #tpu.memory_space<vmem>>, vector<24x128xbf16>
    %c2_162 = arith.constant 2 : index
    %c3_163 = arith.constant 3 : index
    %c0_164 = arith.constant 0 : index
    %c0_165 = arith.constant 0 : index
    %135 = vector.load %arg3[%c2_162, %c3_163, %c0_164, %c0_165] : memref<3x5x128x128xbf16, #tpu.memory_space<vmem>>, vector<1x1x128x128xbf16>
    %136 = vector.shape_cast %135 : vector<1x1x128x128xbf16> to vector<128x128xbf16>
    %cst_166 = arith.constant dense<0.000000e+00> : vector<24x128xf32>
    %137 = tpu.matmul %134, %136, %cst_166 {dimension_numbers = #tpu.dot_dimension_numbers<[1], [0], [0], [1], [0, 0, 1, 1], [], []>} : vector<24x128xbf16>, vector<128x128xbf16>, vector<24x128xf32> -> vector<24x128xf32>
    %c0_167 = arith.constant 0 : index
    %c0_168 = arith.constant 0 : index
    %138 = vector.load %arg9[%c0_167, %c0_168] : memref<24x128xf32, #tpu.memory_space<vmem>>, vector<24x128xf32>
    %139 = arith.addf %138, %137 : vector<24x128xf32>
    %c0_169 = arith.constant 0 : index
    %c0_170 = arith.constant 0 : index
    %140 = vector.load %arg9[%c0_169, %c0_170] : memref<24x128xf32, #tpu.memory_space<vmem>>, vector<24x128xf32>
    tpu.vector_store %arg9[%c0_169, %c0_170], %139 {strides = array<i32>} : memref<24x128xf32, #tpu.memory_space<vmem>>, vector<24x128xf32>,
    %c10_171 = arith.constant 10 : index
    %c0_172 = arith.constant 0 : index
    %141 = vector.load %arg7[%c10_171, %c0_172] : memref<40x128xbf16, #tpu.memory_space<vmem>>, vector<24x128xbf16>
    %c2_173 = arith.constant 2 : index
    %c4_174 = arith.constant 4 : index
    %c0_175 = arith.constant 0 : index
    %c0_176 = arith.constant 0 : index
    %142 = vector.load %arg3[%c2_173, %c4_174, %c0_175, %c0_176] : memref<3x5x128x128xbf16, #tpu.memory_space<vmem>>, vector<1x1x128x128xbf16>
    %143 = vector.shape_cast %142 : vector<1x1x128x128xbf16> to vector<128x128xbf16>
    %cst_177 = arith.constant dense<0.000000e+00> : vector<24x128xf32>
    %144 = tpu.matmul %141, %143, %cst_177 {dimension_numbers = #tpu.dot_dimension_numbers<[1], [0], [0], [1], [0, 0, 1, 1], [], []>} : vector<24x128xbf16>, vector<128x128xbf16>, vector<24x128xf32> -> vector<24x128xf32>
    %c0_178 = arith.constant 0 : index
    %c0_179 = arith.constant 0 : index
    %145 = vector.load %arg9[%c0_178, %c0_179] : memref<24x128xf32, #tpu.memory_space<vmem>>, vector<24x128xf32>
    %146 = arith.addf %145, %144 : vector<24x128xf32>
    %c0_180 = arith.constant 0 : index
    %c0_181 = arith.constant 0 : index
    %147 = vector.load %arg9[%c0_180, %c0_181] : memref<24x128xf32, #tpu.memory_space<vmem>>, vector<24x128xf32>
    tpu.vector_store %arg9[%c0_180, %c0_181], %146 {strides = array<i32>} : memref<24x128xf32, #tpu.memory_space<vmem>>, vector<24x128xf32>,
    %c0_182 = arith.constant 0 : index
    %c0_183 = arith.constant 0 : index
    %148 = vector.load %arg9[%c0_182, %c0_183] : memref<24x128xf32, #tpu.memory_space<vmem>>, vector<24x128xf32>
    %c2_184 = arith.constant 2 : index
    %c0_185 = arith.constant 0 : index
    %c0_186 = arith.constant 0 : index
    %149 = vector.load %arg4[%c2_184, %c0_185, %c0_186] : memref<3x1x128xf32, #tpu.memory_space<vmem>>, vector<1x1x128xf32>
    %150 = vector.shape_cast %149 : vector<1x1x128xf32> to vector<1x128xf32>
    %151 = vector.broadcast %150 : vector<1x128xf32> to vector<24x128xf32>
    %152 = arith.mulf %148, %151 : vector<24x128xf32>
    %c2_187 = arith.constant 2 : index
    %c0_188 = arith.constant 0 : index
    %c0_189 = arith.constant 0 : index
    %153 = vector.load %arg5[%c2_187, %c0_188, %c0_189] : memref<3x1x128xf32, #tpu.memory_space<vmem>>, vector<1x1x128xf32>
    %154 = vector.shape_cast %153 : vector<1x1x128xf32> to vector<1x128xf32>
    %155 = vector.broadcast %154 : vector<1x128xf32> to vector<24x128xf32>
    %156 = arith.addf %152, %155 : vector<24x128xf32>
    %157 = math.tanh %156 : vector<24x128xf32>
    %158 = vector.extract_strided_slice %157 {offsets = [6, 0], sizes = [8, 128], strides = [1, 1]} : vector<24x128xf32> to vector<8x128xf32>
    %c0_190 = arith.constant 0 : index
    %c0_191 = arith.constant 0 : index
    %c0_192 = arith.constant 0 : index
    %c0_193 = arith.constant 0 : index
    %159 = vector.load %arg6[%c0_190, %c0_191, %c0_192, %c0_193] : memref<1x1x8x128xf32, #tpu.memory_space<vmem>>, vector<1x1x8x128xf32>
    %160 = vector.shape_cast %159 : vector<1x1x8x128xf32> to vector<8x128xf32>
    %161 = vector.shape_cast %158 : vector<8x128xf32> to vector<1x1x8x128xf32>
    tpu.vector_store %arg6[%c0_190, %c0_191, %c0_192, %c0_193], %161 {strides = array<i32>} : memref<1x1x8x128xf32, #tpu.memory_space<vmem>>, vector<1x1x8x128xf32>,
    return
  }
  func.func @transform_0(%arg0: i32, %arg1: i32) -> (i32, i32, i32, i32) {
    %c0_i32 = arith.constant 0 : i32
    %c0_i32_0 = arith.constant 0 : i32
    %c0_i32_1 = arith.constant 0 : i32
    return %arg0, %arg1, %c0_i32, %c0_i32_0 : i32, i32, i32, i32
  }
  func.func @transform_1(%arg0: i32, %arg1: i32) -> (i32, i32, i32, i32) {
    %c0_i32 = arith.constant 0 : i32
    %c0_i32_0 = arith.constant 0 : i32
    %c0_i32_1 = arith.constant 0 : i32
    %c0_i32_2 = arith.constant 0 : i32
    %c0_i32_3 = arith.constant 0 : i32
    return %c0_i32, %c0_i32_0, %c0_i32_1, %c0_i32_2 : i32, i32, i32, i32
  }
  func.func @transform_2(%arg0: i32, %arg1: i32) -> (i32, i32, i32) {
    %c0_i32 = arith.constant 0 : i32
    %c0_i32_0 = arith.constant 0 : i32
    %c0_i32_1 = arith.constant 0 : i32
    %c0_i32_2 = arith.constant 0 : i32
    return %c0_i32, %c0_i32_0, %c0_i32_1 : i32, i32, i32
  }
  func.func @transform_3(%arg0: i32, %arg1: i32) -> (i32, i32, i32) {
    %c0_i32 = arith.constant 0 : i32
    %c0_i32_0 = arith.constant 0 : i32
    %c0_i32_1 = arith.constant 0 : i32
    %c0_i32_2 = arith.constant 0 : i32
    return %c0_i32, %c0_i32_0, %c0_i32_1 : i32, i32, i32
  }
  func.func @transform_4(%arg0: i32, %arg1: i32) -> (i32, i32, i32, i32) {
    %c0_i32 = arith.constant 0 : i32
    %c0_i32_0 = arith.constant 0 : i32
    %c0_i32_1 = arith.constant 0 : i32
    return %arg0, %arg1, %c0_i32, %c0_i32_0 : i32, i32, i32, i32
  }
}

</mosaic_0001>

<bundles_post_ra>
// kernel: postnet_forward.1
= control target key start
LH: loop header
LB: loop body
LE: loop exit
PB: predicated region body
PF: predicated region fallthrough
CT: control target
= control target key end

     0   :  { %s3833_s15 = smov 0   ;;  %s3835_s16 = smov 0   ;;  %s4315_s0 = inlined_call_operand.vmem [shape: bf16[2,2,24,128], index: 0, kind: input, shape index: {}]   ;;  %s4316_s1 = inlined_call_operand.vmem [shape: bf16[3,5,128,128], index: 1, kind: input, shape index: {}]   ;;  %s4317_s2 = inlined_call_operand.vmem [shape: f32[3,1,128], index: 2, kind: input, shape index: {}]   ;;  %s4318_s3 = inlined_call_operand.vmem [shape: f32[3,1,128], index: 3, kind: input, shape index: {}]   ;;  %s4319_s4 = inlined_call_operand.vmem [shape: f32[2,2,8,128], index: 4, kind: output, shape index: {}]  }
   0x1   :  { %s3837_s17 = smov 0   ;;  %s3839_s18 = smov 0  }
   0x2   :  { %s3841_s19 = smov 0  }
   0x3 LB: > { %s23_s20 = sadd.s32 1, %s3797_s17  ;;  %s26_s21 = sadd.s32 1, %s3801_s18  ;;  %s3805_s19 = sphi %s3841_s19, %s14_s19   ;;  %s3801_s18 = sphi %s3839_s18, %s4329_s18   ;;  %s3797_s17 = sphi %s3837_s17, %s4328_s17   ;;  %s3793_s16 = sphi %s3835_s16, %s4327_s16   ;;  %s3789_s15 = sphi %s3833_s15, %s4326_s15  }
   0x4   : > { %p24_p0 = scmp.ge.s32.totalorder %s23_s20, 2  ;;  %p2645_p1 = scmp.ge.s32.totalorder %s3805_s19, 1 }
   0x5   : > { %p182_p2 = scmp.lt.s32.totalorder %s3805_s19, 5 }
   0x6   : > { %s4331_s20 = smov (%p24_p0, %s23_s20), 0  ;;  %s4333_s21 = smov (!%p24_p0, %s26_s21), %s3801_s18 }
   0x7   : > { %p183_p3 = pnand %p2645_p1, %p182_p2  ;;  %p28_p4 = scmp.ge.s32.totalorder %s4333_s21, 2 }
   0x8   : > { %v3601_v0 = vld [vmem:[%s4316_s1] sm:$0xff] (!%p183_p3)   ;;  %p215_p5 = scmp.lt.s32.totalorder (!%p183_p3), %s3793_s16, 1  ;;  %p217_p6 = scmp.lt.s32.totalorder (!%p183_p3), %s3789_s15, 1  ;;  %v3603_v2 = vld [vmem:[%s4316_s1 + $0x8] sm:$0xff] (!%p183_p3)   ;;  %v3605_v4 = vld [vmem:[%s4316_s1 + $0x10] sm:$0xff] (!%p183_p3)   ;;  %v3807_v6 = vmov (!%p183_p3), 0  }
   0x9   : > { %s4335_s21 = smov (%p28_p4, %s4333_s21), 0  ;;  %186 = sbr.rel (%p183_p3) target bundleno = 1086 (0x43e), region = 36 }
   0xa   : > { %v3602_v1 = vld [vmem:[%s4316_s1 + $0x80] sm:$0xff] (!%p183_p3)   ;;  %3211 = vmatprep.subr.bf16.mxu1 (!%p183_p3), %v3601_v0  ;;  %v3604_v3 = vld [vmem:[%s4316_s1 + $0x88] sm:$0xff] (!%p183_p3)   ;;  %v3606_v5 = vld [vmem:[%s4316_s1 + $0x90] sm:$0xff] (!%p183_p3)   ;;  %233 = vst [vmem:[#allocation2] sm:$0xf] (!%p183_p3), %v3807_v6  ;;  %vm298_vm0 = vcmask (!%p183_p3), 1044480  }
   0xb   : > { %3251 = vmatprep.subr.bf16.mxu0 (!%p183_p3), %v3602_v1  ;;  %3212 = vmatpush3.bf16.msra.mxu1 (!%p183_p3), %v3601_v0  ;;  %234 = vst [vmem:[#allocation2 + $0x4] sm:$0xf] (!%p183_p3), %v3807_v6  ;;  %235 = vst [vmem:[#allocation2 + $0x8] sm:$0xf] (!%p183_p3), %v3807_v6  ;;  %v3607_v7 = vld [vmem:[%s4316_s1 + $0x18] sm:$0xff] (!%p183_p3)   ;;  %v3609_v9 = vld [vmem:[%s4316_s1 + $0x20] sm:$0xff] (!%p183_p3)  }
   0xc   : > { %3252 = vmatpush3.bf16.msra.mxu0 (!%p183_p3), %v3602_v1  ;;  %3213 = vmatprep.subr.bf16.mxu1 (!%p183_p3), %v3603_v2  ;;  %236 = vst [vmem:[#allocation2 + $0xc] sm:$0xf] (!%p183_p3), %v3807_v6  ;;  %237 = vst [vmem:[#allocation2 + $0x10] sm:$0xf] (!%p183_p3), %v3807_v6  ;;  %v3608_v8 = vld [vmem:[%s4316_s1 + $0x98] sm:$0xff] (!%p183_p3)   ;;  %v3610_v10 = vld [vmem:[%s4316_s1 + $0xa0] sm:$0xff] (!%p183_p3)  }
   0xd   : > { %3253 = vmatprep.subr.bf16.mxu0 (!%p183_p3), %v3604_v3  ;;  %238 = vst [vmem:[#allocation3] sm:$0xf] (!%p183_p3), %v3807_v6  ;;  %239 = vst [vmem:[#allocation3 + $0x4] sm:$0xf] (!%p183_p3), %v3807_v6  ;;  %v3611_v11 = vld [vmem:[%s4316_s1 + $0x28] sm:$0xff] (!%p183_p3)   ;;  %v3613_v15 = vld [vmem:[%s4316_s1 + $0x30] sm:$0xff] (!%p183_p3)  }
   0xe   : > { %240 = vst [vmem:[#allocation3 + $0x8] sm:$0xf] (!%p183_p3), %v3807_v6  ;;  %241 = vst [vmem:[#allocation3 + $0xc] sm:$0xf] (!%p183_p3), %v3807_v6  ;;  %v3612_v14 = vld [vmem:[%s4316_s1 + $0xa8] sm:$0xff] (!%p183_p3)   ;;  %v3614_v16 = vld [vmem:[%s4316_s1 + $0xb0] sm:$0xff] (!%p183_p3)  }
   0xf   : > { %3214 = vmatpush3.bf16.msra.mxu1 (!%p183_p3), %v3603_v2  ;;  %242 = vst [vmem:[#allocation3 + $0x10] sm:$0xf] (!%p183_p3), %v3807_v6  ;;  %v3615_v17 = vld [vmem:[%s4316_s1 + $0x38] sm:$0xff] (!%p183_p3)   ;;  %v3619_v24 = vld [vmem:[%s4316_s1 + $0x40] sm:$0xff] (!%p183_p3)   ;;  %v3623_v28 = vld [vmem:[%s4316_s1 + $0x48] sm:$0xff] (!%p183_p3)   ;;  %vm879_vm3 = vcmask (!%p183_p3), 1046528  }
  0x10   : > { %s4337_s16 = smov (!%p215_p5, %s3793_s16), 1  ;;  %3254 = vmatpush3.bf16.msra.mxu0 %v3604_v3  ;;  %3215 = vmatprep.subr.bf16.mxu1 %v3605_v4  ;;  %v3616_v18 = vld [vmem:[%s4316_s1 + $0xb8] sm:$0xff]   ;;  %v3621_v26 = vld [vmem:[%s4316_s1 + $0xc0] sm:$0xff]   ;;  %v3624_v29 = vld [vmem:[%s4316_s1 + $0xc8] sm:$0xff]   ;;  %vm434_vm1 = vsmask.f32 4352 }
  0x11   : > { %s3881_s30 = scalar_select %p217_p6, %s3789_s15, 1  ;;  %3255 = vmatprep.subr.bf16.mxu0 %v3606_v5  ;;  %v3625_v30 = vld [vmem:[%s4316_s1 + $0x50] sm:$0xff]   ;;  %v3627_v32 = vld [vmem:[%s4316_s1 + $0x58] sm:$0xff]   ;;  %v3629_v44 = vld [vmem:[%s4316_s1 + $0x60] sm:$0xff]   ;;  %vm725_vm2 = vsmask.f32 7424 }
  0x12   : > { %s3559_s7 = smul.u32 6, %s4337_s16  ;;  %v3626_v31 = vld [vmem:[%s4316_s1 + $0xd0] sm:$0xff]   ;;  %v3628_v40 = vld [vmem:[%s4316_s1 + $0xd8] sm:$0xff]   ;;  %v3630_v53 = vld [vmem:[%s4316_s1 + $0xe0] sm:$0xff]   ;;  %s2649_s12 = sshll.u32 %s3789_s15, 3 }
  0x13   : > { %s3558_s10 = smul.u32 3, %s3881_s30  ;;  %3216 = vmatpush3.bf16.msra.mxu1 %v3605_v4  ;;  %v3631_v58 = vld [vmem:[%s4316_s1 + $0x68] sm:$0xff]   ;;  %v3633_v60 = vld [vmem:[%s4316_s1 + $0x70] sm:$0xff]   ;;  %v3635_v1 = vld [vmem:[%s4316_s1 + $0x78] sm:$0xff]   ;;  %s2650_s24 = sadd.s32 4294967290, %s2649_s12 }
  0x14   : > { %3256 = vmatpush3.bf16.msra.mxu0 %v3606_v5  ;;  %3217 = vmatprep.subr.bf16.mxu1 %v3607_v7  ;;  %v3632_v59 = vld [vmem:[%s4316_s1 + $0xe8] sm:$0xff]   ;;  %v3634_v62 = vld [vmem:[%s4316_s1 + $0xf0] sm:$0xff]   ;;  %v3636_v4 = vld [vmem:[%s4316_s1 + $0xf8] sm:$0xff]  }
  0x15   : > { %s221_s11 = sadd.s32 %s3559_s7, %s3558_s10  ;;  %3257 = vmatprep.subr.bf16.mxu0 %v3608_v8  ;;  %v3641_v5 = vld [vmem:[%s4316_s1 + $0x100] sm:$0xff]  }
  0x16   : > { %s2646_s23 = sshll.u32 %s221_s11, 2 }
  0x17   : > { %s223_s5 = scalar_lea.vmem %s4315_s0, %s2646_s23  ;;  %3218 = vmatpush3.bf16.msra.mxu1 %v3607_v7  ;;  %v3642_v7 = vld [vmem:[%s4316_s1 + $0x108] sm:$0xff]   ;;  %s2647_s23 = sshll.u32 %s4337_s16, 1 }
  0x18   : > { %3258 = vmatpush3.bf16.msra.mxu0 %v3608_v8  ;;  %3219 = vmatprep.subr.bf16.mxu1 %v3609_v9  ;;  %v243_v12 = vld [vmem:[%s223_s5] sm:$0xff]   ;;  %v245_v13 = vld [vmem:[%s223_s5 + $0x8] sm:$0xf] }
  0x19   : > { %3259 = vmatprep.subr.bf16.mxu0 %v3610_v10  ;;  %246 = vst [vmem:[#allocation2 + $0x4] sm:$0xff] %v243_v12   ;;  %248 = vst [vmem:[#allocation2 + $0xc] sm:$0xf] %v245_v13  ;;  %v3646_v12 = vld [vmem:[%s4316_s1 + $0x128] sm:$0xff]   ;;  %v3647_v13 = vld [vmem:[%s4316_s1 + $0x130] sm:$0xff]  }
  0x1b   : > { %3220 = vmatpush3.bf16.msra.mxu1 %v3609_v9  ;;  %v3643_v9 = vld [vmem:[%s4316_s1 + $0x110] sm:$0xff]  }
  0x1c   : > { %3260 = vmatpush3.bf16.msra.mxu0 %v3610_v10  ;;  %3221 = vmatprep.subr.bf16.mxu1 %v3611_v11  ;;  %v3644_v10 = vld [vmem:[%s4316_s1 + $0x118] sm:$0xff]  }
  0x1d   : > { %3261 = vmatprep.subr.bf16.mxu0 %v3612_v14 }
  0x1f   : > { %3222 = vmatpush3.bf16.msra.mxu1 %v3611_v11  ;;  %v3645_v11 = vld [vmem:[%s4316_s1 + $0x120] sm:$0xff]  }
  0x20   : > { %3262 = vmatpush3.bf16.msra.mxu0 %v3612_v14  ;;  %3223 = vmatprep.subr.bf16.mxu1 %v3613_v15  ;;  %v3617_v19 = vld [vmem:[#allocation2] sm:$0xf8]   ;;  %v3618_v20 = vld [vmem:[#allocation2 + $0x8] sm:$0x7f]   ;;  %v3648_v14 = vld [vmem:[%s4316_s1 + $0x138] sm:$0xff]  }
  0x21   : > { %3263 = vmatprep.subr.bf16.mxu0 %v3614_v16  ;;  %v3620_v21 = vld [vmem:[#allocation2 + $0x4] sm:$0xff]   ;;  %v299_v22 = vrot.slane %v3617_v19, 3  ;;  %v300_v23 = vrot.slane %v3618_v20, 3  ;;  %v3622_v27 = vld [vmem:[#allocation2 + $0xc] ss:$0 sps:$4 sm:$0xff]  }
  0x22   : > { %3267 = vmatprep.mubr.bf16.mxu0 %v3620_v21  ;;  %v3637_v33 = vld [vmem:[#allocation2] sm:$0xf8]   ;;  %v3638_v34 = vld [vmem:[#allocation2 + $0x8] sm:$0xff]   ;;  %v3657_v21 = vld [vmem:[%s4316_s1 + $0x170] sm:$0xff]  }
  0x23   : > { %3224 = vmatpush3.bf16.msra.mxu1 %v3613_v15  ;;  %v301_v25 = vsel %vm298_vm0, %v299_v22, %v300_v23  ;;  %v3639_v35 = vld [vmem:[#allocation2 + $0x4] sm:$0xff]   ;;  %v436_v36 = vshrl.u32 %v3637_v33, 16  ;;  %v439_v37 = vshll.u32 %v3637_v33, 16  ;;  %v444_v38 = vshrl.u32 %v3638_v34, 16  ;;  %v3640_v41 = vld [vmem:[#allocation2 + $0xc] sm:$0x1f]  }
  0x24   : > { %3264 = vmatpush3.bf16.msra.mxu0 %v3614_v16  ;;  %3225 = vmatprep.subr.bf16.mxu1 %v3615_v17  ;;  %v447_v39 = vshll.u32 %v3638_v34, 16  ;;  %v727_v42 = vshrl.u32 %v3639_v35, 16  ;;  %v729_v43 = vshll.u32 %v3639_v35, 16  ;;  %v734_v50 = vshll.u32 %v3640_v41, 16  ;;  %v3649_v63 = vld [vmem:[#allocation2 + $0x4] sm:$0xfe]  }
  0x25   : > { %3265 = vmatprep.subr.bf16.mxu0 %v3616_v18  ;;  %3227 = vmatprep.mubr.bf16.mxu1 %v301_v25  ;;  %v438_v45 = vrot.slane %v436_v36, 3  ;;  %v441_v46 = vrot.slane %v439_v37, 4  ;;  %v446_v47 = vrot.slane %v444_v38, 3  ;;  %v738_v61 = vshrl.u32 %v3640_v41, 16  ;;  %v3650_v0 = vld [vmem:[#allocation2 + $0xc] sm:$0x1f]  }
  0x26   : > { %v449_v48 = vrot.slane %v447_v39, 4  ;;  %v731_v49 = vrot.slane %v729_v43, 1  ;;  %v736_v55 = vrot.slane %v734_v50, 1  ;;  %v880_v2 = vrot.slane %v3649_v63, 1  ;;  %v3651_v15 = vld [vmem:[%s4316_s1 + $0x140] sm:$0xff]   ;;  %v3652_v16 = vld [vmem:[%s4316_s1 + $0x148] sm:$0xff]  }
  0x27   : > { %3226 = vmatpush3.bf16.msra.mxu1 %v3615_v17  ;;  %v442_v51 = vor.u32 %v441_v46, %v438_v45  ;;  %v881_v3 = vrot.slane %v3650_v0, 1  ;;  %v3653_v17 = vld [vmem:[%s4316_s1 + $0x150] sm:$0xff]   ;;  %v3655_v19 = vld [vmem:[%s4316_s1 + $0x160] sm:$0xff]   ;;  %v3656_v20 = vld [vmem:[%s4316_s1 + $0x168] sm:$0xff]   ;;  %v255_v43 = vstv %s2650_s24  ;;  %s229_s24 = sadd.s32 %s2647_s23, %s3881_s30 }
  0x28   : > { %3266 = vmatpush3.bf16.msra.mxu0 %v3616_v18  ;;  %3231 = vmatprep.subr.bf16.mxu1 %v3619_v24  ;;  %v450_v52 = vor.u32 %v449_v48, %v446_v47  ;;  %v732_v54 = vor.u32 %v731_v49, %v727_v42  ;;  %v740_v6 = vor.u32 %v738_v61, %v736_v55  ;;  %v3654_v18 = vld [vmem:[%s4316_s1 + $0x158] sm:$0xff]   ;;  %v2766_v34 = vld [vmem:[%s4318_s3] ss:$0 sm:$0xff]  ;;  %s2648_s15 = sshll.u32 %s229_s24, 3 }
  0x29   : > { %3271 = vmatprep.subr.bf16.mxu0 %v3621_v26  ;;  %v882_v8 = vsel %vm879_vm3, %v880_v2, %v881_v3  ;;  %v3658_v22 = vld [vmem:[%s4316_s1 + $0x178] sm:$0xff]   ;;  %s231_s27 = scalar_lea.vmem %s4319_s4, %s2648_s15 }
  0x2a   : > { %3228 = vmatmul.mubr.bf16.vlgmr.msra.gmra.mrb[0].mxu1 %v300_v23  ;;  %v451_v56 = vsel %vm434_vm1, %v442_v51, %v450_v52  ;;  %v737_v57 = vsel %vm725_vm2, %v732_v54, %v736_v55  ;;  %v4027_v23 = vld [vmem:[%s4316_s1 + $0x180] sm:$0xff]  }
  0x2b   : > { %3232 = vmatpush3.bf16.msra.mxu1 %v3619_v24  ;;  %3268 = vmatmul.mubr.bf16.vlgmr.msra.gmra.mrb[0].mxu0 %v3622_v27 }
  0x2c   : > { %3272 = vmatpush3.bf16.msra.mxu0 %v3621_v26  ;;  %3233 = vmatprep.subr.bf16.mxu1 %v3623_v28 }
  0x2d   : > { %3273 = vmatprep.subr.bf16.mxu0 %v3624_v29  ;;  %3247 = vmatprep.mubr.bf16.mxu1 %v451_v56 }
  0x2e   : > { %3287 = vmatprep.mubr.bf16.mxu0 %v737_v57 }
  0x2f   : > { %3234 = vmatpush3.bf16.msra.mxu1 %v3623_v28  ;;  %v251_v28 = vlaneseq }
  0x30   : > { %3274 = vmatpush3.bf16.msra.mxu0 %v3624_v29  ;;  %3235 = vmatprep.subr.bf16.mxu1 %v3625_v30 }
  0x31   : > { %3275 = vmatprep.subr.bf16.mxu0 %v3626_v31  ;;  %v252_v33 = vshrl.u32 %v251_v28, 7  ;;  %v3676_v28 = vld [vmem:[%s4316_s1 + $0x1e0] sm:$0xff]  }
  0x33   : > { %3236 = vmatpush3.bf16.msra.mxu1 %v3625_v30  ;;  %v2765_v30 = vld [vmem:[%s4317_s2] ss:$0 sm:$0xff]  ;;  %v254_v42 = vadd.s32 16, %v252_v33  ;;  %v253_v46 = vadd.s32 8, %v252_v33  ;;  %v256_v48 = vadd.s32 %v255_v43, %v252_v33  ;;  %v3679_v33 = vld [vmem:[%s4316_s1 + $0x1f8] sm:$0xff]  }
  0x34   : > { %3276 = vmatpush3.bf16.msra.mxu0 %v3626_v31  ;;  %3237 = vmatprep.subr.bf16.mxu1 %v3627_v32 }
  0x35   : > { %3277 = vmatprep.subr.bf16.mxu0 %v3628_v40  ;;  %v258_v49 = vadd.s32 %v255_v43, %v254_v42  ;;  %v257_v50 = vadd.s32 %v255_v43, %v253_v46  ;;  %vm259_vm4 = vcmp.ge.s32.totalorder %v256_v48, 0  ;;  %vm262_vm5 = vcmp.lt.s32.totalorder %v256_v48, 16  ;;  %v3684_v42 = vld [vmem:[%s4316_s1 + $0x208] sm:$0xff]   ;;  %v3687_v46 = vld [vmem:[%s4316_s1 + $0x220] sm:$0xff]   ;;  %v3689_v48 = vld [vmem:[%s4316_s1 + $0x230] sm:$0xff]  }
  0x36   : > { %vm4037_vm10 = vmand %vm259_vm4, %vm262_vm5 }
  0x37   : > { %3238 = vmatpush3.bf16.msra.mxu1 %v3627_v32  ;;  %vm261_vm6 = vcmp.ge.s32.totalorder %v258_v49, 0  ;;  %vm264_vm7 = vcmp.lt.s32.totalorder %v258_v49, 16  ;;  %vm260_vm8 = vcmp.ge.s32.totalorder %v257_v50, 0  ;;  %vm263_vm9 = vcmp.lt.s32.totalorder %v257_v50, 16  ;;  %v3690_v49 = vld [vmem:[%s4316_s1 + $0x238] sm:$0xff]  }
  0x38   : > { %3278 = vmatpush3.bf16.msra.mxu0 %v3628_v40  ;;  %3239 = vmatprep.subr.bf16.mxu1 %v3629_v44  ;;  %vm4041_vm11 = vmand %vm261_vm6, %vm264_vm7 }
  0x39   : > { %3279 = vmatprep.subr.bf16.mxu0 %v3630_v53  ;;  %vm4045_vm12 = vmand %vm260_vm8, %vm263_vm9 }
  0x3b   : > { %3240 = vmatpush3.bf16.msra.mxu1 %v3629_v44 }
  0x3c   : > { %3280 = vmatpush3.bf16.msra.mxu0 %v3630_v53  ;;  %3241 = vmatprep.subr.bf16.mxu1 %v3631_v58 }
  0x3d   : > { %3281 = vmatprep.subr.bf16.mxu0 %v3632_v59 }
  0x3f   : > { %3242 = vmatpush3.bf16.msra.mxu1 %v3631_v58 }
  0x40   : > { %3282 = vmatpush3.bf16.msra.mxu0 %v3632_v59  ;;  %3243 = vmatprep.subr.bf16.mxu1 %v3633_v60 }
  0x41   : > { %3283 = vmatprep.subr.bf16.mxu0 %v3634_v62 }
  0x43   : > { %3244 = vmatpush3.bf16.msra.mxu1 %v3633_v60 }
  0x44   : > { %3284 = vmatpush3.bf16.msra.mxu0 %v3634_v62  ;;  %3245 = vmatprep.subr.bf16.mxu1 %v3635_v1 }
  0x45   : > { %3285 = vmatprep.subr.bf16.mxu0 %v3636_v4 }
  0x47   : > { %3246 = vmatpush3.bf16.msra.mxu1 %v3635_v1 }
  0x48   : > { %3286 = vmatpush3.bf16.msra.mxu0 %v3636_v4  ;;  %3311 = vmatprep.subr.bf16.mxu1 %v3651_v15 }
  0x49   : > { %3291 = vmatprep.subr.bf16.mxu0 %v3641_v5 }
  0x4a   : > { %3248 = vmatmul.mubr.bf16.vlgmr.msra.gmra.mrb[0].mxu1 %v450_v52 }
  0x4b   : > { %3288 = vmatmul.mubr.bf16.vlgmr.msra.gmra.mrb[0].mxu0 %v740_v6  ;;  %3312 = vmatpush3.bf16.msra.mxu1 %v3651_v15  ;;  %v3662_v6 = vld [vmem:[%s4316_s1 + $0x188] sm:$0xff]  }
  0x4c   : > { %3292 = vmatpush3.bf16.msra.mxu0 %v3641_v5  ;;  %3307 = vmatprep.mubr.bf16.mxu0 %v882_v8 }
  0x4d   : > { %3293 = vmatprep.subr.bf16.mxu0 %v3642_v7  ;;  %3313 = vmatprep.subr.bf16.mxu1 %v3652_v16 }
  0x4f   : > { %3314 = vmatpush3.bf16.msra.mxu1 %v3652_v16  ;;  %v3665_v16 = vld [vmem:[%s4316_s1 + $0x190] sm:$0xff]  }
  0x50   : > { %3294 = vmatpush3.bf16.msra.mxu0 %v3642_v7  ;;  %3315 = vmatprep.subr.bf16.mxu1 %v3653_v17 }
  0x51   : > { %3295 = vmatprep.subr.bf16.mxu0 %v3643_v9 }
  0x53   : > { %3316 = vmatpush3.bf16.msra.mxu1 %v3653_v17 }
  0x54   : > { %3296 = vmatpush3.bf16.msra.mxu0 %v3643_v9  ;;  %3317 = vmatprep.subr.bf16.mxu1 %v3654_v18 }
  0x55   : > { %3297 = vmatprep.subr.bf16.mxu0 %v3644_v10 }
  0x57   : > { %3318 = vmatpush3.bf16.msra.mxu1 %v3654_v18  ;;  %v3666_v18 = vld [vmem:[%s4316_s1 + $0x198] sm:$0xff]  }
  0x58   : > { %3298 = vmatpush3.bf16.msra.mxu0 %v3644_v10  ;;  %3319 = vmatprep.subr.bf16.mxu1 %v3655_v19 }
  0x59   : > { %3299 = vmatprep.subr.bf16.mxu0 %v3645_v11 }
  0x5b   : > { %3320 = vmatpush3.bf16.msra.mxu1 %v3655_v19  ;;  %v3667_v19 = vld [vmem:[%s4316_s1 + $0x1a0] sm:$0xff]  }
  0x5c   : > { %3300 = vmatpush3.bf16.msra.mxu0 %v3645_v11  ;;  %3321 = vmatprep.subr.bf16.mxu1 %v3656_v20 }
  0x5d   : > { %3301 = vmatprep.subr.bf16.mxu0 %v3646_v12 }
  0x5f   : > { %3322 = vmatpush3.bf16.msra.mxu1 %v3656_v20  ;;  %v3668_v20 = vld [vmem:[%s4316_s1 + $0x1a8] sm:$0xff]  }
  0x60   : > { %3302 = vmatpush3.bf16.msra.mxu0 %v3646_v12  ;;  %3323 = vmatprep.subr.bf16.mxu1 %v3657_v21 }
  0x61   : > { %3303 = vmatprep.subr.bf16.mxu0 %v3647_v13 }
  0x63   : > { %3324 = vmatpush3.bf16.msra.mxu1 %v3657_v21  ;;  %v3669_v21 = vld [vmem:[%s4316_s1 + $0x1b0] sm:$0xff]  }
  0x64   : > { %3304 = vmatpush3.bf16.msra.mxu0 %v3647_v13  ;;  %3325 = vmatprep.subr.bf16.mxu1 %v3658_v22 }
  0x65   : > { %3305 = vmatprep.subr.bf16.mxu0 %v3648_v14 }
  0x67   : > { %3326 = vmatpush3.bf16.msra.mxu1 %v3658_v22  ;;  %v3670_v22 = vld [vmem:[%s4316_s1 + $0x1b8] sm:$0xff]  }
  0x68   : > { %3306 = vmatpush3.bf16.msra.mxu0 %v3648_v14  ;;  %3331 = vmatprep.subr.bf16.mxu1 %v4027_v23 }
  0x6b   : > { %3308 = vmatmul.mubr.bf16.vlgmr.msra.gmra.mrb[0].mxu0 %v881_v3 }
 0x11d   : > { %v3249_v24 = vpop.f32.mrb[0].mxu1 }
 0x11e   : > { %v536_v25 = vpop.f32.mrb[1].mxu1 }
 0x11f   : > { %v3250_v26 = vpop.f32.mrb[2].mxu1 }
 0x120   : > { %v539_v27 = vpop.f32.mrb[3].mxu1  ;;  %v3674_v26 = vld [vmem:[%s4316_s1 + $0x1d0] sm:$0xff]  }
 0x13e   : > { %v3309_v29 = vpop.f32.mrb[0].mxu0 }
 0x13f   : > { %v3511_v31 = vadd.f32 %v3309_v29, %v3249_v24  ;;  %v967_v32 = vpop.f32.mrb[1].mxu0  ;;  %v3673_v24 = vld [vmem:[%s4316_s1 + $0x1c8] sm:$0xff]  }
 0x140   : > { %v3512_v35 = vadd.f32 %v967_v32, %v536_v25  ;;  %v3310_v36 = vpop.f32.mrb[2].mxu0  ;;  %v3677_v29 = vld [vmem:[%s4316_s1 + $0x1e8] sm:$0xff]  }
 0x141   : > { %v1002_v37 = vmul.f32 %v3511_v31, %v2765_v30  ;;  %v970_v38 = vpop.f32.mrb[3].mxu0  ;;  %v3678_v31 = vld [vmem:[%s4316_s1 + $0x1f0] sm:$0xff]   ;;  %v3681_v36 = vld [vmem:[%s4316_s1 + $0x200] sm:$0xff]  }
 0x142   : > { %v1000_v39 = vmul.f32 %v3512_v35, %v2765_v30  ;;  %v3513_v40 = vadd.f32 %v970_v38, %v539_v27  ;;  %v3675_v27 = vld [vmem:[%s4316_s1 + $0x1d8] sm:$0xff]  }
 0x143   : > { %v1012_v41 = vadd.f32 %v2766_v34, %v1002_v37 }
 0x144   : > { %v1010_v44 = vadd.f32 %v2766_v34, %v1000_v39  ;;  %v1001_v45 = vmul.f32 %v3513_v40, %v2765_v30 }
 0x145   : > { %3751 = vtanh.f32 %v1012_v41 }
 0x146   : > { %3753 = vtanh.f32 %v1010_v44  ;;  %v1011_v47 = vadd.f32 %v2766_v34, %v1001_v45  ;;  %v3685_v44 = vld [vmem:[%s4316_s1 + $0x210] sm:$0xff]   ;;  %v3686_v45 = vld [vmem:[%s4316_s1 + $0x218] sm:$0xff]  }
 0x148   : > { %3755 = vtanh.f32 %v1011_v47  ;;  %v3688_v47 = vld [vmem:[%s4316_s1 + $0x228] sm:$0xff]  }
 0x14f   : > { %v3752_v52 = vpop.eup %3751 }
 0x150   : > { %v3754_v54 = vpop.eup %3753  ;;  %v1024_v59 = vsel %vm4041_vm11, %v3752_v52, 0.0 }
 0x151   : > { %v1022_v56 = vsel %vm4037_vm10, %v3754_v54, 0.0  ;;  %v3691_v54 = vld [vmem:[%s4316_s1 + $0x240] sm:$0xff]  }
 0x152   : > { %v3756_v57 = vpop.eup %3755  ;;  %v3043_v58 = vpack.c.bf16 %v1022_v56, %v1022_v56 }
 0x153   : > { %v1023_v60 = vsel %vm4045_vm12, %v3756_v57, 0.0 }
 0x154   : > { %1038 = vst [vmem:[#allocation3 + $0x4] sm:$0xf] %v3043_v58  ;;  %v3052_v61 = vpack.c.bf16 %v1024_v59, %v1023_v60  ;;  %v3694_v60 = vld [vmem:[%s4316_s1 + $0x248] sm:$0xff]  }
 0x156   : > { %3059 = vst [vmem:[#allocation3 + $0x8] sm:$0xff] %v3052_v61  }
 0x15b   : > { %v3659_v62 = vld [vmem:[#allocation3] sm:$0xf8]  }
 0x15c   : > { %v3663_v63 = vld [vmem:[#allocation3] sm:$0xf8]   ;;  %v1072_v2 = vrot.slane %v3659_v62, 3 }
 0x15d   : > { %v3660_v0 = vld [vmem:[#allocation3 + $0x8] sm:$0x7f]   ;;  %v1208_v4 = vshrl.u32 %v3663_v63, 16  ;;  %v1211_v5 = vshll.u32 %v3663_v63, 16  ;;  %v3695_v62 = vld [vmem:[%s4316_s1 + $0x250] sm:$0xff]  }
 0x15e   : > { %v3664_v1 = vld [vmem:[#allocation3 + $0x8] sm:$0xff]   ;;  %v1073_v3 = vrot.slane %v3660_v0, 3 }
 0x15f   : > { %v1216_v7 = vshrl.u32 %v3664_v1, 16  ;;  %v1219_v8 = vshll.u32 %v3664_v1, 16  ;;  %v1210_v10 = vrot.slane %v1208_v4, 3  ;;  %v1213_v11 = vrot.slane %v1211_v5, 4  ;;  %v3672_v25 = vld [vmem:[#allocation3 + $0x4] sm:$0xff]   ;;  %v3697_v0 = vld [vmem:[%s4316_s1 + $0x260] sm:$0xff]  }
 0x160   : > { %v1074_v9 = vsel %vm298_vm0, %v1072_v2, %v1073_v3  ;;  %v3682_v30 = vld [vmem:[#allocation3 + $0x4] sm:$0xff]   ;;  %v3683_v34 = vld [vmem:[#allocation3 + $0xc] sm:$0x1f]   ;;  %v3698_v1 = vld [vmem:[%s4316_s1 + $0x268] sm:$0xff]  }
 0x161   : > { %3327 = vmatprep.mubr.bf16.mxu1 %v1074_v9  ;;  %v1218_v12 = vrot.slane %v1216_v7, 3  ;;  %v1221_v13 = vrot.slane %v1219_v8, 4  ;;  %v1214_v14 = vor.u32 %v1213_v11, %v1210_v10  ;;  %v1500_v32 = vshll.u32 %v3682_v30, 16  ;;  %v3680_v40 = vld [vmem:[#allocation3 + $0xc] ss:$0 sps:$4 sm:$0xff]   ;;  %v3696_v63 = vld [vmem:[%s4316_s1 + $0x258] sm:$0xff]  }
 0x162   : > { %3328 = vmatmul.mubr.bf16.vlgmr.msra.gmra.mrb[4].mxu1 %v1073_v3  ;;  %v1498_v37 = vshrl.u32 %v3682_v30, 16  ;;  %v1505_v38 = vshll.u32 %v3683_v34, 16  ;;  %v3692_v50 = vld [vmem:[#allocation3 + $0x4] sm:$0xfe]   ;;  %v3693_v52 = vld [vmem:[#allocation3 + $0xc] sm:$0x1f]  }
 0x163   : > { %3332 = vmatpush3.bf16.msra.mxu1 %v4027_v23  ;;  %v1222_v15 = vor.u32 %v1221_v13, %v1218_v12  ;;  %v3671_v23 = vld [vmem:[%s4316_s1 + $0x1c0] sm:$0xff]   ;;  %v1502_v35 = vrot.slane %v1500_v32, 1  ;;  %v1509_v56 = vshrl.u32 %v3683_v34, 16  ;;  %v1650_v57 = vrot.slane %v3692_v50, 1  ;;  %v3699_v2 = vld [vmem:[%s4316_s1 + $0x270] sm:$0xff]   ;;  %v3700_v3 = vld [vmem:[%s4316_s1 + $0x278] sm:$0xff]  }
 0x164   : > { %3333 = vmatprep.subr.bf16.mxu1 %v3662_v6  ;;  %v1507_v41 = vrot.slane %v1505_v38, 1  ;;  %v1651_v58 = vrot.slane %v3693_v52, 1  ;;  %v3701_v4 = vld [vmem:[%s4316_s1 + $0x280] sm:$0xff]   ;;  %v3702_v5 = vld [vmem:[%s4316_s1 + $0x288] sm:$0xff]   ;;  %v3704_v7 = vld [vmem:[%s4316_s1 + $0x298] sm:$0xff]  }
 0x165   : > { %v1223_v17 = vsel %vm434_vm1, %v1214_v14, %v1222_v15  ;;  %v1503_v39 = vor.u32 %v1502_v35, %v1498_v37  ;;  %3411 = vmatprep.subr.bf16.mxu0 %v3701_v4  ;;  %v3705_v8 = vld [vmem:[%s4316_s1 + $0x2a0] sm:$0xff]   ;;  %v3706_v9 = vld [vmem:[%s4316_s1 + $0x2a8] sm:$0xff]   ;;  %v3707_v10 = vld [vmem:[%s4316_s1 + $0x2b0] sm:$0xff]  }
 0x166   : > { %3347 = vmatprep.mubr.bf16.mxu1 %v1223_v17  ;;  %v1511_v59 = vor.u32 %v1509_v56, %v1507_v41  ;;  %v1652_v61 = vsel %vm879_vm3, %v1650_v57, %v1651_v58  ;;  %3412 = vmatpush3.bf16.msra.mxu0 %v3701_v4  ;;  %v3708_v11 = vld [vmem:[%s4316_s1 + $0x2b8] sm:$0xff]   ;;  %v3711_v12 = vld [vmem:[%s4316_s1 + $0x2c0] sm:$0xff]   ;;  %v3719_v56 = vld [vmem:[%s4316_s1 + $0x2f0] sm:$0xff]  }
 0x167   : > { %3334 = vmatpush3.bf16.msra.mxu1 %v3662_v6  ;;  %v1508_v43 = vsel %vm725_vm2, %v1503_v39, %v1507_v41  ;;  %3413 = vmatprep.subr.bf16.mxu0 %v3702_v5  ;;  %v3703_v6 = vld [vmem:[%s4316_s1 + $0x290] sm:$0xff]   ;;  %v2901_v13 = vld [vmem:[%s4317_s2 + $0x1] ss:$0 sm:$0xff]  ;;  %v3716_v50 = vld [vmem:[%s4316_s1 + $0x2d8] sm:$0xff]  }
 0x168   : > { %3335 = vmatprep.subr.bf16.mxu1 %v3665_v16  ;;  %v3717_v52 = vld [vmem:[%s4316_s1 + $0x2e0] sm:$0xff]   ;;  %v3720_v57 = vld [vmem:[%s4316_s1 + $0x2f8] sm:$0xff]  }
 0x169   : > { %v3729_v4 = vld [vmem:[%s4316_s1 + $0x338] sm:$0xff]  }
 0x16a   : > { %3414 = vmatpush3.bf16.msra.mxu0 %v3702_v5 }
 0x16b   : > { %3336 = vmatpush3.bf16.msra.mxu1 %v3665_v16  ;;  %3415 = vmatprep.subr.bf16.mxu0 %v3703_v6 }
 0x16c   : > { %3337 = vmatprep.subr.bf16.mxu1 %v3666_v18 }
 0x16e   : > { %3416 = vmatpush3.bf16.msra.mxu0 %v3703_v6 }
 0x16f   : > { %3338 = vmatpush3.bf16.msra.mxu1 %v3666_v18  ;;  %3417 = vmatprep.subr.bf16.mxu0 %v3704_v7 }
 0x170   : > { %3339 = vmatprep.subr.bf16.mxu1 %v3667_v19 }
 0x172   : > { %3418 = vmatpush3.bf16.msra.mxu0 %v3704_v7  ;;  %v3731_v7 = vld [vmem:[%s4316_s1 + $0x340] sm:$0xff]  }
 0x173   : > { %3340 = vmatpush3.bf16.msra.mxu1 %v3667_v19  ;;  %3419 = vmatprep.subr.bf16.mxu0 %v3705_v8 }
 0x174   : > { %3341 = vmatprep.subr.bf16.mxu1 %v3668_v20 }
 0x176   : > { %3420 = vmatpush3.bf16.msra.mxu0 %v3705_v8 }
 0x177   : > { %3342 = vmatpush3.bf16.msra.mxu1 %v3668_v20  ;;  %3421 = vmatprep.subr.bf16.mxu0 %v3706_v9 }
 0x178   : > { %3343 = vmatprep.subr.bf16.mxu1 %v3669_v21 }
 0x17a   : > { %3422 = vmatpush3.bf16.msra.mxu0 %v3706_v9 }
 0x17b   : > { %3344 = vmatpush3.bf16.msra.mxu1 %v3669_v21  ;;  %3423 = vmatprep.subr.bf16.mxu0 %v3707_v10 }
 0x17c   : > { %3345 = vmatprep.subr.bf16.mxu1 %v3670_v22 }
 0x17e   : > { %3424 = vmatpush3.bf16.msra.mxu0 %v3707_v10 }
 0x17f   : > { %3346 = vmatpush3.bf16.msra.mxu1 %v3670_v22  ;;  %3425 = vmatprep.subr.bf16.mxu0 %v3708_v11 }
 0x180   : > { %3351 = vmatprep.subr.bf16.mxu1 %v3671_v23 }
 0x182   : > { %3348 = vmatmul.mubr.bf16.vlgmr.msra.gmra.mrb[4].mxu1 %v1222_v15  ;;  %3426 = vmatpush3.bf16.msra.mxu0 %v3708_v11  ;;  %v2903_v15 = vld [vmem:[%s4318_s3 + $0x1] ss:$0 sm:$0xff] }
 0x183   : > { %3352 = vmatpush3.bf16.msra.mxu1 %v3671_v23  ;;  %3367 = vmatprep.mubr.bf16.mxu1 %v3672_v25 }
 0x184   : > { %3353 = vmatprep.subr.bf16.mxu1 %v3673_v24  ;;  %3431 = vmatprep.subr.bf16.mxu0 %v3711_v12 }
 0x187   : > { %3354 = vmatpush3.bf16.msra.mxu1 %v3673_v24 }
 0x188   : > { %3355 = vmatprep.subr.bf16.mxu1 %v3674_v26 }
 0x18b   : > { %3356 = vmatpush3.bf16.msra.mxu1 %v3674_v26 }
 0x18c   : > { %3357 = vmatprep.subr.bf16.mxu1 %v3675_v27 }
 0x18f   : > { %3358 = vmatpush3.bf16.msra.mxu1 %v3675_v27 }
 0x190   : > { %3359 = vmatprep.subr.bf16.mxu1 %v3676_v28 }
 0x193   : > { %3360 = vmatpush3.bf16.msra.mxu1 %v3676_v28 }
 0x194   : > { %3361 = vmatprep.subr.bf16.mxu1 %v3677_v29 }
 0x197   : > { %3362 = vmatpush3.bf16.msra.mxu1 %v3677_v29 }
 0x198   : > { %3363 = vmatprep.subr.bf16.mxu1 %v3678_v31 }
 0x19b   : > { %3364 = vmatpush3.bf16.msra.mxu1 %v3678_v31 }
 0x19c   : > { %3365 = vmatprep.subr.bf16.mxu1 %v3679_v33 }
 0x19f   : > { %3366 = vmatpush3.bf16.msra.mxu1 %v3679_v33 }
 0x1a0   : > { %3371 = vmatprep.subr.bf16.mxu1 %v3681_v36 }
 0x1a2   : > { %3368 = vmatmul.mubr.bf16.vlgmr.msra.gmra.mrb[4].mxu1 %v3680_v40  ;;  %v3712_v40 = vld [vmem:[%s4316_s1 + $0x2c8] sm:$0xff]  }
 0x1a3   : > { %3372 = vmatpush3.bf16.msra.mxu1 %v3681_v36  ;;  %3387 = vmatprep.mubr.bf16.mxu1 %v1508_v43 }
 0x1a4   : > { %3373 = vmatprep.subr.bf16.mxu1 %v3684_v42 }
 0x1a7   : > { %3374 = vmatpush3.bf16.msra.mxu1 %v3684_v42 }
 0x1a8   : > { %3375 = vmatprep.subr.bf16.mxu1 %v3685_v44 }
 0x1ab   : > { %3376 = vmatpush3.bf16.msra.mxu1 %v3685_v44 }
 0x1ac   : > { %3377 = vmatprep.subr.bf16.mxu1 %v3686_v45 }
 0x1af   : > { %3378 = vmatpush3.bf16.msra.mxu1 %v3686_v45 }
 0x1b0   : > { %3379 = vmatprep.subr.bf16.mxu1 %v3687_v46 }
 0x1b3   : > { %3380 = vmatpush3.bf16.msra.mxu1 %v3687_v46 }
 0x1b4   : > { %3381 = vmatprep.subr.bf16.mxu1 %v3688_v47 }
 0x1b7   : > { %3382 = vmatpush3.bf16.msra.mxu1 %v3688_v47 }
 0x1b8   : > { %3383 = vmatprep.subr.bf16.mxu1 %v3689_v48 }
 0x1bb   : > { %3384 = vmatpush3.bf16.msra.mxu1 %v3689_v48  ;;  %v3715_v48 = vld [vmem:[%s4316_s1 + $0x2d0] sm:$0xff]  }
 0x1bc   : > { %3385 = vmatprep.subr.bf16.mxu1 %v3690_v49 }
 0x1bf   : > { %3386 = vmatpush3.bf16.msra.mxu1 %v3690_v49 }
 0x1c0   : > { %3391 = vmatprep.subr.bf16.mxu1 %v3691_v54 }
 0x1c2   : > { %3388 = vmatmul.mubr.bf16.vlgmr.msra.gmra.mrb[4].mxu1 %v1511_v59  ;;  %v3723_v59 = vld [vmem:[%s4316_s1 + $0x308] sm:$0xff]  }
 0x1c3   : > { %3392 = vmatpush3.bf16.msra.mxu1 %v3691_v54  ;;  %3407 = vmatprep.mubr.bf16.mxu1 %v1652_v61  ;;  %v3718_v54 = vld [vmem:[%s4316_s1 + $0x2e8] sm:$0xff]   ;;  %v3724_v61 = vld [vmem:[%s4316_s1 + $0x310] sm:$0xff]  }
 0x1c4   : > { %3393 = vmatprep.subr.bf16.mxu1 %v3694_v60 }
 0x1c7   : > { %3394 = vmatpush3.bf16.msra.mxu1 %v3694_v60 }
 0x1c8   : > { %3395 = vmatprep.subr.bf16.mxu1 %v3695_v62 }
 0x1cb   : > { %3396 = vmatpush3.bf16.msra.mxu1 %v3695_v62  ;;  %v3725_v62 = vld [vmem:[%s4316_s1 + $0x318] sm:$0xff]  }
 0x1cc   : > { %3397 = vmatprep.subr.bf16.mxu1 %v3696_v63 }
 0x1cf   : > { %3398 = vmatpush3.bf16.msra.mxu1 %v3696_v63  ;;  %v3726_v63 = vld [vmem:[%s4316_s1 + $0x320] sm:$0xff]  }
 0x1d0   : > { %3399 = vmatprep.subr.bf16.mxu1 %v3697_v0 }
 0x1d3   : > { %3400 = vmatpush3.bf16.msra.mxu1 %v3697_v0  ;;  %v3727_v0 = vld [vmem:[%s4316_s1 + $0x328] sm:$0xff]  }
 0x1d4   : > { %3401 = vmatprep.subr.bf16.mxu1 %v3698_v1 }
 0x1d7   : > { %3402 = vmatpush3.bf16.msra.mxu1 %v3698_v1 }
 0x1d8   : > { %3403 = vmatprep.subr.bf16.mxu1 %v3699_v2 }
 0x1db   : > { %3404 = vmatpush3.bf16.msra.mxu1 %v3699_v2  ;;  %v3728_v2 = vld [vmem:[%s4316_s1 + $0x330] sm:$0xff]  }
 0x1dc   : > { %3405 = vmatprep.subr.bf16.mxu1 %v3700_v3 }
 0x1df   : > { %3406 = vmatpush3.bf16.msra.mxu1 %v3700_v3 }
 0x1e2   : > { %3408 = vmatmul.mubr.bf16.vlgmr.msra.gmra.mrb[4].mxu1 %v1651_v58  ;;  %v3721_v58 = vld [vmem:[%s4316_s1 + $0x300] sm:$0xff]  }
 0x2b5   : > { %v3409_v14 = vpop.f32.mrb[4].mxu1 }
 0x2b6   : > { %v1773_v16 = vmul.f32 %v3409_v14, %v2901_v13  ;;  %v1737_v17 = vpop.f32.mrb[5].mxu1 }
 0x2b7   : > { %v1771_v18 = vmul.f32 %v2901_v13, %v1737_v17  ;;  %v3410_v19 = vpop.f32.mrb[6].mxu1  ;;  %v3737_v17 = vld [vmem:[%s4316_s1 + $0x360] sm:$0xff]  }
 0x2b8   : > { %v1784_v20 = vadd.f32 %v2903_v15, %v1773_v16  ;;  %v1740_v21 = vpop.f32.mrb[7].mxu1  ;;  %v3736_v16 = vld [vmem:[%s4316_s1 + $0x358] sm:$0xff]   ;;  %v3739_v19 = vld [vmem:[%s4316_s1 + $0x370] sm:$0xff]  }
 0x2b9   : > { %v1782_v22 = vadd.f32 %v2903_v15, %v1771_v18  ;;  %v1772_v23 = vmul.f32 %v2901_v13, %v1740_v21  ;;  %v3734_v13 = vld [vmem:[%s4316_s1 + $0x348] sm:$0xff]  }
 0x2ba   : > { %3757 = vtanh.f32 %v1784_v20  ;;  %v3738_v18 = vld [vmem:[%s4316_s1 + $0x368] sm:$0xff]   ;;  %v3740_v20 = vld [vmem:[%s4316_s1 + $0x378] sm:$0xff]  }
 0x2bb   : > { %3759 = vtanh.f32 %v1782_v22  ;;  %v1783_v24 = vadd.f32 %v2903_v15, %v1772_v23  ;;  %v3735_v15 = vld [vmem:[%s4316_s1 + $0x350] sm:$0xff]   ;;  %v3741_v23 = vld [vmem:[%s4316_s1 + $0x380] sm:$0xff]  }
 0x2bd   : > { %3761 = vtanh.f32 %v1783_v24 }
 0x2c4   : > { %v3758_v25 = vpop.eup %3757 }
 0x2c5   : > { %v3760_v26 = vpop.eup %3759  ;;  %v1790_v30 = vsel %vm4041_vm11, %v3758_v25, 0.0 }
 0x2c6   : > { %v1788_v27 = vsel %vm4037_vm10, %v3760_v26, 0.0 }
 0x2c7   : > { %v3762_v28 = vpop.eup %3761  ;;  %v3046_v29 = vpack.c.bf16 %v1788_v27, %v1788_v27 }
 0x2c8   : > { %v1789_v31 = vsel %vm4045_vm12, %v3762_v28, 0.0  ;;  %v3744_v28 = vld [vmem:[%s4316_s1 + $0x388] sm:$0xff]  }
 0x2c9   : > { %1804 = vst [vmem:[#allocation2 + $0x4] sm:$0xf] %v3046_v29  ;;  %v3057_v32 = vpack.c.bf16 %v1790_v30, %v1789_v31  ;;  %v3745_v30 = vld [vmem:[%s4316_s1 + $0x390] sm:$0xff]   ;;  %v3746_v31 = vld [vmem:[%s4316_s1 + $0x398] sm:$0xff]  }
 0x2cb   : > { %3060 = vst [vmem:[#allocation2 + $0x8] sm:$0xff] %v3057_v32   ;;  %v3747_v32 = vld [vmem:[%s4316_s1 + $0x3a0] sm:$0xff]  }
 0x2d0   : > { %v3709_v33 = vld [vmem:[#allocation2] sm:$0xf8]  }
 0x2d1   : > { %v3713_v34 = vld [vmem:[#allocation2] sm:$0xf8]   ;;  %v1838_v37 = vrot.slane %v3709_v33, 3  ;;  %v3748_v33 = vld [vmem:[%s4316_s1 + $0x3a8] sm:$0xff]  }
 0x2d2   : > { %v3710_v35 = vld [vmem:[#allocation2 + $0x8] sm:$0x7f]   ;;  %v1974_v39 = vshrl.u32 %v3713_v34, 16  ;;  %v1977_v51 = vshll.u32 %v3713_v34, 16  ;;  %v3749_v34 = vld [vmem:[%s4316_s1 + $0x3b0] sm:$0xff]  }
 0x2d3   : > { %v3714_v36 = vld [vmem:[#allocation2 + $0x8] sm:$0xff]   ;;  %v1839_v38 = vrot.slane %v3710_v35, 3  ;;  %v3750_v35 = vld [vmem:[%s4316_s1 + $0x3b8] sm:$0xff]  }
 0x2d4   : > { %v1982_v53 = vshrl.u32 %v3714_v36, 16  ;;  %v1985_v41 = vshll.u32 %v3714_v36, 16  ;;  %v1976_v42 = vrot.slane %v1974_v39, 3  ;;  %v1979_v43 = vrot.slane %v1977_v51, 4  ;;  %v3722_v60 = vld [vmem:[#allocation2 + $0x4] sm:$0xff]  }
 0x2d5   : > { %v1840_v55 = vsel %vm298_vm0, %v1838_v37, %v1839_v38  ;;  %v3732_v1 = vld [vmem:[#allocation2 + $0x4] sm:$0xff]   ;;  %v3733_v5 = vld [vmem:[#allocation2 + $0xc] sm:$0x1f]   ;;  %v3038_v36 = vld [vmem:[%s4317_s2 + $0x2] ss:$0 sm:$0xff] }
 0x2d6   : > { %3427 = vmatprep.mubr.bf16.mxu0 %v1840_v55  ;;  %v1984_v44 = vrot.slane %v1982_v53, 3  ;;  %v1987_v45 = vrot.slane %v1985_v41, 4  ;;  %v1980_v46 = vor.u32 %v1979_v43, %v1976_v42  ;;  %v2266_v3 = vshll.u32 %v3732_v1, 16  ;;  %v3730_v11 = vld [vmem:[#allocation2 + $0xc] ss:$0 sps:$4 sm:$0xff]  }
 0x2d7   : > { %3428 = vmatmul.mubr.bf16.vlgmr.msra.gmra.mrb[4].mxu0 %v1839_v38  ;;  %v2264_v8 = vshrl.u32 %v3732_v1, 16  ;;  %v2271_v9 = vshll.u32 %v3733_v5, 16  ;;  %v3742_v21 = vld [vmem:[#allocation2 + $0x4] sm:$0xfe]   ;;  %v3743_v22 = vld [vmem:[#allocation2 + $0xc] sm:$0x1f]  }
 0x2d8   : > { %3432 = vmatpush3.bf16.msra.mxu0 %v3711_v12  ;;  %v1988_v47 = vor.u32 %v1987_v45, %v1984_v44  ;;  %v2268_v6 = vrot.slane %v2266_v3, 1  ;;  %v2275_v24 = vshrl.u32 %v3733_v5, 16  ;;  %v2416_v25 = vrot.slane %v3742_v21, 1  ;;  %v3040_v39 = vld [vmem:[%s4318_s3 + $0x2] ss:$0 sm:$0xff] }
 0x2d9   : > { %3433 = vmatprep.subr.bf16.mxu0 %v3712_v40  ;;  %v2273_v12 = vrot.slane %v2271_v9, 1  ;;  %v2417_v26 = vrot.slane %v3743_v22, 1 }
 0x2da   : > { %v1989_v49 = vsel %vm434_vm1, %v1980_v46, %v1988_v47  ;;  %v2269_v10 = vor.u32 %v2268_v6, %v2264_v8 }
 0x2db   : > { %3447 = vmatprep.mubr.bf16.mxu0 %v1989_v49  ;;  %v2277_v27 = vor.u32 %v2275_v24, %v2273_v12  ;;  %v2418_v29 = vsel %vm879_vm3, %v2416_v25, %v2417_v26 }
 0x2dc   : > { %3434 = vmatpush3.bf16.msra.mxu0 %v3712_v40  ;;  %v2274_v14 = vsel %vm725_vm2, %v2269_v10, %v2273_v12 }
 0x2dd   : > { %3435 = vmatprep.subr.bf16.mxu0 %v3715_v48 }
 0x2e0   : > { %3436 = vmatpush3.bf16.msra.mxu0 %v3715_v48 }
 0x2e1   : > { %3437 = vmatprep.subr.bf16.mxu0 %v3716_v50 }
 0x2e4   : > { %3438 = vmatpush3.bf16.msra.mxu0 %v3716_v50 }
 0x2e5   : > { %3439 = vmatprep.subr.bf16.mxu0 %v3717_v52 }
 0x2e8   : > { %3440 = vmatpush3.bf16.msra.mxu0 %v3717_v52 }
 0x2e9   : > { %3441 = vmatprep.subr.bf16.mxu0 %v3718_v54 }
 0x2ec   : > { %3442 = vmatpush3.bf16.msra.mxu0 %v3718_v54 }
 0x2ed   : > { %3443 = vmatprep.subr.bf16.mxu0 %v3719_v56 }
 0x2f0   : > { %3444 = vmatpush3.bf16.msra.mxu0 %v3719_v56 }
 0x2f1   : > { %3445 = vmatprep.subr.bf16.mxu0 %v3720_v57 }
 0x2f4   : > { %3446 = vmatpush3.bf16.msra.mxu0 %v3720_v57 }
 0x2f5   : > { %3451 = vmatprep.subr.bf16.mxu0 %v3721_v58 }
 0x2f7   : > { %3448 = vmatmul.mubr.bf16.vlgmr.msra.gmra.mrb[4].mxu0 %v1988_v47 }
 0x2f8   : > { %3452 = vmatpush3.bf16.msra.mxu0 %v3721_v58  ;;  %3467 = vmatprep.mubr.bf16.mxu0 %v3722_v60 }
 0x2f9   : > { %3453 = vmatprep.subr.bf16.mxu0 %v3723_v59 }
 0x2fc   : > { %3454 = vmatpush3.bf16.msra.mxu0 %v3723_v59 }
 0x2fd   : > { %3455 = vmatprep.subr.bf16.mxu0 %v3724_v61 }
 0x300   : > { %3456 = vmatpush3.bf16.msra.mxu0 %v3724_v61 }
 0x301   : > { %3457 = vmatprep.subr.bf16.mxu0 %v3725_v62 }
 0x304   : > { %3458 = vmatpush3.bf16.msra.mxu0 %v3725_v62 }
 0x305   : > { %3459 = vmatprep.subr.bf16.mxu0 %v3726_v63 }
 0x308   : > { %3460 = vmatpush3.bf16.msra.mxu0 %v3726_v63 }
 0x309   : > { %3461 = vmatprep.subr.bf16.mxu0 %v3727_v0 }
 0x30c   : > { %3462 = vmatpush3.bf16.msra.mxu0 %v3727_v0 }
 0x30d   : > { %3463 = vmatprep.subr.bf16.mxu0 %v3728_v2 }
 0x310   : > { %3464 = vmatpush3.bf16.msra.mxu0 %v3728_v2 }
 0x311   : > { %3465 = vmatprep.subr.bf16.mxu0 %v3729_v4 }
 0x314   : > { %3466 = vmatpush3.bf16.msra.mxu0 %v3729_v4 }
 0x315   : > { %3471 = vmatprep.subr.bf16.mxu0 %v3731_v7 }
 0x317   : > { %3468 = vmatmul.mubr.bf16.vlgmr.msra.gmra.mrb[4].mxu0 %v3730_v11 }
 0x318   : > { %3472 = vmatpush3.bf16.msra.mxu0 %v3731_v7  ;;  %3487 = vmatprep.mubr.bf16.mxu0 %v2274_v14 }
 0x319   : > { %3473 = vmatprep.subr.bf16.mxu0 %v3734_v13 }
 0x31c   : > { %3474 = vmatpush3.bf16.msra.mxu0 %v3734_v13 }
 0x31d   : > { %3475 = vmatprep.subr.bf16.mxu0 %v3735_v15 }
 0x320   : > { %3476 = vmatpush3.bf16.msra.mxu0 %v3735_v15 }
 0x321   : > { %3477 = vmatprep.subr.bf16.mxu0 %v3736_v16 }
 0x324   : > { %3478 = vmatpush3.bf16.msra.mxu0 %v3736_v16 }
 0x325   : > { %3479 = vmatprep.subr.bf16.mxu0 %v3737_v17 }
 0x328   : > { %3480 = vmatpush3.bf16.msra.mxu0 %v3737_v17 }
 0x329   : > { %3481 = vmatprep.subr.bf16.mxu0 %v3738_v18 }
 0x32c   : > { %3482 = vmatpush3.bf16.msra.mxu0 %v3738_v18 }
 0x32d   : > { %3483 = vmatprep.subr.bf16.mxu0 %v3739_v19 }
 0x330   : > { %3484 = vmatpush3.bf16.msra.mxu0 %v3739_v19 }
 0x331   : > { %3485 = vmatprep.subr.bf16.mxu0 %v3740_v20 }
 0x334   : > { %3486 = vmatpush3.bf16.msra.mxu0 %v3740_v20 }
 0x335   : > { %3491 = vmatprep.subr.bf16.mxu0 %v3741_v23 }
 0x337   : > { %3488 = vmatmul.mubr.bf16.vlgmr.msra.gmra.mrb[4].mxu0 %v2277_v27 }
 0x338   : > { %3492 = vmatpush3.bf16.msra.mxu0 %v3741_v23  ;;  %3507 = vmatprep.mubr.bf16.mxu0 %v2418_v29 }
 0x339   : > { %3493 = vmatprep.subr.bf16.mxu0 %v3744_v28 }
 0x33c   : > { %3494 = vmatpush3.bf16.msra.mxu0 %v3744_v28 }
 0x33d   : > { %3495 = vmatprep.subr.bf16.mxu0 %v3745_v30 }
 0x340   : > { %3496 = vmatpush3.bf16.msra.mxu0 %v3745_v30 }
 0x341   : > { %3497 = vmatprep.subr.bf16.mxu0 %v3746_v31 }
 0x344   : > { %3498 = vmatpush3.bf16.msra.mxu0 %v3746_v31 }
 0x345   : > { %3499 = vmatprep.subr.bf16.mxu0 %v3747_v32 }
 0x348   : > { %3500 = vmatpush3.bf16.msra.mxu0 %v3747_v32 }
 0x349   : > { %3501 = vmatprep.subr.bf16.mxu0 %v3748_v33 }
 0x34c   : > { %3502 = vmatpush3.bf16.msra.mxu0 %v3748_v33 }
 0x34d   : > { %3503 = vmatprep.subr.bf16.mxu0 %v3749_v34 }
 0x350   : > { %3504 = vmatpush3.bf16.msra.mxu0 %v3749_v34 }
 0x351   : > { %3505 = vmatprep.subr.bf16.mxu0 %v3750_v35 }
 0x354   : > { %3506 = vmatpush3.bf16.msra.mxu0 %v3750_v35 }
 0x357   : > { %3508 = vmatmul.mubr.bf16.vlgmr.msra.gmra.mrb[4].mxu0 %v2417_v26 }
 0x42a   : > { %v3509_v37 = vpop.f32.mrb[4].mxu0 }
 0x42b   : > { %v2503_v38 = vpop.f32.mrb[5].mxu0 }
 0x42c   : > { %v2536_v51 = vmul.f32 %v3038_v36, %v2503_v38  ;;  %v3510_v40 = vpop.f32.mrb[6].mxu0 }
 0x42d   : > { %v2506_v53 = vpop.f32.mrb[7].mxu0 }
 0x42e   : > { %v2546_v41 = vadd.f32 %v3040_v39, %v2536_v51  ;;  %v2537_v55 = vmul.f32 %v3038_v36, %v2506_v53 }
 0x430   : > { %3763 = vtanh.f32 %v2546_v41  ;;  %v2547_v42 = vadd.f32 %v3040_v39, %v2537_v55 }
 0x432   : > { %3765 = vtanh.f32 %v2547_v42 }
 0x43a   : > { %v3764_v43 = vpop.eup %3763 }
 0x43b   : > { %2550 = vst [vmem:[%s231_s27 - $0x6] sm:$0xc0] %v3764_v43 }
 0x43c   : > { %v3766_v44 = vpop.eup %3765 }
 0x43d   : > { %2551 = vst [vmem:[%s231_s27 + $0x2] sm:$0x3f] %v3766_v44 }
 0x43e PF: > { %s14_s19 = sadd.s32 1, %s3805_s19   ;;  %s4326_s15 = smov %s3797_s17 }
 0x43f   : > { %p11_p7 = scmp.ge.s32.totalorder %s14_s19, 6   ;;  %s4327_s16 = smov %s3801_s18 }
 0x440   : > { %s4328_s17 = smov %s4331_s20  ;;  %s4329_s18 = smov %s4335_s21 }
 0x441   :  { %13 = sbr.rel (!%p11_p7) target bundleno = 3 (0x3), region = 84 }

</bundles_post_ra>
